<compile_context>
chip_gen: v6e
topology: v6e:2x2x1
jax: 0.10.0
libtpu: 0.0.40
codegen_flags: <defaults>
</compile_context>

<pallas_src>
import functools

import numpy as np
import jax
import jax.numpy as jnp
from jax import lax
from jax.experimental import pallas as pl
from jax.experimental.pallas import tpu as pltpu


def mlp_kernel(x_ref, w_ref, gb_ref, wout_ref, bout_ref, out_ref, act_ref,
               *, eps, layers_per_step):
    """One grid step applies `layers_per_step` (Linear -> BN -> ReLU) layers.

    x_ref    : (B, N)      f32  -- input activations (consumed at step 0 only)
    w_ref    : (k, N, N)   bf16 -- this group's linear weights, stored (in, out)
    gb_ref   : (k, 2, N)   f32  -- this group's BN [gamma; beta]
    wout_ref : (N, D)      bf16 -- output Linear weight, stored (in, out)
    bout_ref : (1, D)      f32  -- output Linear bias
    out_ref  : (B, D)      f32  -- final output (written once, at the last step)
    act_ref  : (B, N)      f32  -- VMEM-resident activations, carried across steps
    """
    step = pl.program_id(0)

    @pl.when(step == 0)
    def _():
        act_ref[...] = x_ref[...]

    def one_layer(l, carry):
        # Linear (bias=False): bf16 operands, f32 MXU accumulation; the whole
        # batch is folded into the MXU M dimension.
        h = jnp.dot(act_ref[...].astype(jnp.bfloat16), w_ref[l],
                    preferred_element_type=jnp.float32)

        # BatchNorm1d, training-mode batch statistics, fused single-pass form:
        # one pass for sum / sum-of-squares, (1, N) scale/shift vectors, then
        # one fused (B, N) pass for affine + ReLU.
        mean = jnp.mean(h, axis=0, keepdims=True)
        mean_sq = jnp.mean(h * h, axis=0, keepdims=True)
        var = jnp.maximum(mean_sq - mean * mean, 0.0)   # clamp cancellation
        gb = gb_ref[l]                                  # (2, N): [gamma; beta]
        scale = gb[0:1, :] * lax.rsqrt(var + eps)
        shift = gb[1:2, :] - mean * scale
        act_ref[...] = jnp.maximum(h * scale + shift, 0.0)
        return carry

    lax.fori_loop(0, layers_per_step, one_layer, 0, unroll=True)

    # Output Linear (with bias) at the last step; single lane-dense store.
    @pl.when(step == pl.num_programs(0) - 1)
    def _():
        out_ref[...] = (
            jnp.dot(act_ref[...].astype(jnp.bfloat16), wout_ref[...],
                    preferred_element_type=jnp.float32)
            + bout_ref[...]
        )


def mlp_forward(x, w_stack, gamma, beta, w_out, b_out, *,
                eps=1e-5, layers_per_step=4):
    """Pallas implementation of MLP.forward (training-mode BatchNorm)."""
    B, N = x.shape
    L = w_stack.shape[0]
    D = w_out.shape[1]
    assert w_stack.shape == (L, N, N)
    assert gamma.shape == (L, N) and beta.shape == (L, N)
    assert w_out.shape == (N, D) and b_out.shape == (D,)

    # Pick the largest divisor of L that is <= layers_per_step.
    k = max(1, min(layers_per_step, L))
    while L % k:
        k -= 1
    steps = L // k

    # Weights streamed as bf16 (half the HBM bytes, 3x fewer MXU passes);
    # BN params and biases stay f32.
    w_bf = w_stack.astype(jnp.bfloat16)
    wout_bf = w_out.astype(jnp.bfloat16)
    gb = jnp.stack([gamma, beta], axis=1).astype(jnp.float32)   # (L, 2, N)
    bout2 = b_out.reshape(1, D).astype(jnp.float32)

    kernel = functools.partial(mlp_kernel, eps=eps, layers_per_step=k)

    cost = pl.CostEstimate(
        flops=2 * L * B * N * N + 2 * B * N * D,
        transcendentals=L * N,
        bytes_accessed=(B * N * 4 + L * N * N * 2 + L * 2 * N * 4
                        + N * D * 2 + D * 4 + B * D * 4),
    )

    return pl.pallas_call(
        kernel,
        out_shape=jax.ShapeDtypeStruct((B, D), jnp.float32),
        grid=(steps,),
        in_specs=[
            pl.BlockSpec((B, N), lambda s: (0, 0)),         # x (used at step 0)
            pl.BlockSpec((k, N, N), lambda s: (s, 0, 0)),   # layer-group weights
            pl.BlockSpec((k, 2, N), lambda s: (s, 0, 0)),   # layer-group BN gamma/beta
            pl.BlockSpec((N, D), lambda s: (0, 0)),         # output weight
            pl.BlockSpec((1, D), lambda s: (0, 0)),         # output bias
        ],
        out_specs=pl.BlockSpec((B, D), lambda s: (0, 0)),
        scratch_shapes=[pltpu.VMEM((B, N), jnp.float32)],
        compiler_params=pltpu.CompilerParams(
            dimension_semantics=("arbitrary",)),            # sequential over layer groups
        cost_estimate=cost,
    )(x.astype(jnp.float32), w_bf, gb, wout_bf, bout2)


def reference_forward_f32(x, w_stack, gamma, beta, w_out, b_out, eps=1e-5):
    """Pure-f32 JAX transcription of the PyTorch forward."""
    h = x
    for l in range(w_stack.shape[0]):
        h = jnp.dot(h, w_stack[l], precision=jax.lax.Precision.HIGHEST)
        mean = jnp.mean(h, axis=0, keepdims=True)
        var = jnp.mean((h - mean) ** 2, axis=0, keepdims=True)
        h = (h - mean) * lax.rsqrt(var + eps)
        h = h * gamma[l][None, :] + beta[l][None, :]
        h = jnp.maximum(h, 0.0)
    return jnp.dot(h, w_out, precision=jax.lax.Precision.HIGHEST) + b_out[None, :]


def reference_forward_kernel_math(x, w_stack, gamma, beta, w_out, b_out, eps=1e-5):
    """Reference that mirrors the kernel's numerics (bf16 matmul operands,
    f32 accumulation, one-pass BN statistics)."""
    h = x.astype(jnp.float32)
    for l in range(w_stack.shape[0]):
        h = jnp.dot(h.astype(jnp.bfloat16), w_stack[l].astype(jnp.bfloat16),
                    preferred_element_type=jnp.float32)
        mean = jnp.mean(h, axis=0, keepdims=True)
        var = jnp.maximum(jnp.mean(h * h, axis=0, keepdims=True) - mean * mean, 0.0)
        scale = gamma[l][None, :] * lax.rsqrt(var + eps)
        shift = beta[l][None, :] - mean * scale
        h = jnp.maximum(h * scale + shift, 0.0)
    return (jnp.dot(h.astype(jnp.bfloat16), w_out.astype(jnp.bfloat16),
                    preferred_element_type=jnp.float32) + b_out[None, :])


if __name__ == "__main__":
    # Small, deterministic configuration consistent with the module.
    B = 256            # batch
    N = 128            # neural_num (lane-dense)
    D = 128            # dim (lane-dense output)
    L = 8              # layers (module default is 100; 8 keeps the demo small)
    K_PER_STEP = 4     # layers processed per grid step

    key = jax.random.PRNGKey(0)
    kx, kw, kwo, kbo = jax.random.split(key, 4)

    x = jax.random.normal(kx, (B, N), jnp.float32)

    # Linear weights, kaiming_normal_ (std = sqrt(2 / fan_in)), stored in
    # (in_features, out_features) layout so the kernel computes x @ W
    # (equivalent to torch's x @ W.T with W stored (out, in)).
    w_stack = jax.random.normal(kw, (L, N, N), jnp.float32) * np.sqrt(2.0 / N)
    w_out = jax.random.normal(kwo, (N, D), jnp.float32) * np.sqrt(2.0 / N)
    b_out = jax.random.normal(kbo, (D,), jnp.float32) * 0.01

    # nn.BatchNorm1d default affine parameters.
    gamma = jnp.ones((L, N), jnp.float32)
    beta = jnp.zeros((L, N), jnp.float32)

    out = mlp_forward(x, w_stack, gamma, beta, w_out, b_out,
                      layers_per_step=K_PER_STEP)
    out = jax.block_until_ready(out)
    assert out.shape == (B, D)

    # 1) Tight check against a reference with the same numerics as the kernel.
    ref_same = jax.block_until_ready(
        reference_forward_kernel_math(x, w_stack, gamma, beta, w_out, b_out))
    np.testing.assert_allclose(np.asarray(out), np.asarray(ref_same),
                               rtol=2e-3, atol=2e-3)

    # 2) Aggregate drift check against the full-f32 PyTorch-style reference
    #    (bf16 matmul operands introduce small, layer-compounding rounding).
    ref_f32 = jax.block_until_ready(
        reference_forward_f32(x, w_stack, gamma, beta, w_out, b_out))
    rel_err = float(jnp.mean(jnp.abs(out - ref_f32)) /
                    jnp.mean(jnp.abs(ref_f32)))
    assert rel_err < 0.1, f"bf16 drift vs f32 reference too large: {rel_err}"

    print("KERNEL_OK")
</pallas_src>

<mosaic_0001>
module attributes {stable_mosaic.version = 11 : i64} {
  func.func @mlp_kernel(%arg0: i32, %arg1: memref<256x128xf32, #tpu.memory_space<vmem>>, %arg2: memref<4x128x128xbf16, #tpu.memory_space<vmem>>, %arg3: memref<4x2x128xf32, #tpu.memory_space<vmem>>, %arg4: memref<128x128xbf16, #tpu.memory_space<vmem>>, %arg5: memref<1x128xf32, #tpu.memory_space<vmem>>, %arg6: memref<256x128xf32, #tpu.memory_space<vmem>>, %arg7: memref<256x128xf32, #tpu.memory_space<vmem>>) attributes {dimension_semantics = [#tpu.dimension_semantics<arbitrary>], iteration_bounds = array<i64: 2>, scalar_prefetch = 0 : i64, scratch_operands = 1 : i64, tpu.core_type = #tpu.core_type<tc>, window_params = [{pipeline_mode = #tpu.pipeline_mode<synchronous>, transform_indices = @transform_0, window_bounds = array<i64: 256, 128>}, {transform_indices = @transform_1, window_bounds = array<i64: 4, 128, 128>}, {transform_indices = @transform_2, window_bounds = array<i64: 4, 2, 128>}, {pipeline_mode = #tpu.pipeline_mode<synchronous>, transform_indices = @transform_3, window_bounds = array<i64: 128, 128>}, {pipeline_mode = #tpu.pipeline_mode<synchronous>, transform_indices = @transform_4, window_bounds = array<i64: 1, 128>}, {pipeline_mode = #tpu.pipeline_mode<synchronous>, transform_indices = @transform_5, window_bounds = array<i64: 256, 128>}]} {
    %c0_i32 = arith.constant 0 : i32
    %0 = arith.cmpi eq, %arg0, %c0_i32 : i32
    %1 = arith.extui %0 : i1 to i32
    %c0_i32_0 = arith.constant 0 : i32
    %2 = arith.cmpi ne, %1, %c0_i32_0 : i32
    scf.if %2 {
      %c0_66 = arith.constant 0 : index
      %c0_67 = arith.constant 0 : index
      %154 = vector.load %arg1[%c0_66, %c0_67] : memref<256x128xf32, #tpu.memory_space<vmem>>, vector<256x128xf32>
      %c0_68 = arith.constant 0 : index
      %c0_69 = arith.constant 0 : index
      %155 = vector.load %arg7[%c0_68, %c0_69] : memref<256x128xf32, #tpu.memory_space<vmem>>, vector<256x128xf32>
      tpu.vector_store %arg7[%c0_68, %c0_69], %154 {strides = array<i32>} : memref<256x128xf32, #tpu.memory_space<vmem>>, vector<256x128xf32>,
    } else {
    }
    %c0_i32_1 = arith.constant 0 : i32
    %c0 = arith.constant 0 : index
    %c0_2 = arith.constant 0 : index
    %3 = vector.load %arg7[%c0, %c0_2] : memref<256x128xf32, #tpu.memory_space<vmem>>, vector<256x128xf32>
    %4 = arith.truncf %3 : vector<256x128xf32> to vector<256x128xbf16>
    %5 = arith.index_cast %c0_i32_1 : i32 to index
    %c0_3 = arith.constant 0 : index
    %c0_4 = arith.constant 0 : index
    %6 = vector.load %arg2[%5, %c0_3, %c0_4] : memref<4x128x128xbf16, #tpu.memory_space<vmem>>, vector<1x128x128xbf16>
    %7 = vector.shape_cast %6 : vector<1x128x128xbf16> to vector<128x128xbf16>
    %cst = arith.constant dense<0.000000e+00> : vector<256x128xf32>
    %8 = tpu.matmul %4, %7, %cst {dimension_numbers = #tpu.dot_dimension_numbers<[1], [0], [0], [1], [0, 0, 1, 1], [], []>} : vector<256x128xbf16>, vector<128x128xbf16>, vector<256x128xf32> -> vector<256x128xf32>
    %cst_5 = arith.constant dense<0.000000e+00> : vector<128xf32>
    %9 = vector.multi_reduction <add>, %8, %cst_5 [0] : vector<256x128xf32> to vector<128xf32>
    %10 = vector.shape_cast %9 : vector<128xf32> to vector<1x128xf32>
    %cst_6 = arith.constant 2.560000e+02 : f32
    %11 = vector.broadcast %cst_6 : f32 to vector<1x128xf32>
    %12 = arith.divf %10, %11 : vector<1x128xf32>
    %13 = arith.mulf %8, %8 : vector<256x128xf32>
    %cst_7 = arith.constant dense<0.000000e+00> : vector<128xf32>
    %14 = vector.multi_reduction <add>, %13, %cst_7 [0] : vector<256x128xf32> to vector<128xf32>
    %15 = vector.shape_cast %14 : vector<128xf32> to vector<1x128xf32>
    %cst_8 = arith.constant 2.560000e+02 : f32
    %16 = vector.broadcast %cst_8 : f32 to vector<1x128xf32>
    %17 = arith.divf %15, %16 : vector<1x128xf32>
    %18 = arith.mulf %12, %12 : vector<1x128xf32>
    %19 = arith.subf %17, %18 : vector<1x128xf32>
    %cst_9 = arith.constant 0.000000e+00 : f32
    %20 = vector.broadcast %cst_9 : f32 to vector<1x128xf32>
    %21 = arith.maximumf %19, %20 : vector<1x128xf32>
    %22 = arith.index_cast %c0_i32_1 : i32 to index
    %c0_10 = arith.constant 0 : index
    %c0_11 = arith.constant 0 : index
    %23 = vector.load %arg3[%22, %c0_10, %c0_11] : memref<4x2x128xf32, #tpu.memory_space<vmem>>, vector<1x2x128xf32>
    %24 = vector.shape_cast %23 : vector<1x2x128xf32> to vector<2x128xf32>
    %25 = vector.extract_strided_slice %24 {offsets = [0, 0], sizes = [1, 128], strides = [1, 1]} : vector<2x128xf32> to vector<1x128xf32>
    %cst_12 = arith.constant 9.99999974E-6 : f32
    %26 = vector.broadcast %cst_12 : f32 to vector<1x128xf32>
    %27 = arith.addf %21, %26 : vector<1x128xf32>
    %28 = math.rsqrt %27 : vector<1x128xf32>
    %29 = arith.mulf %25, %28 : vector<1x128xf32>
    %30 = vector.extract_strided_slice %24 {offsets = [1, 0], sizes = [1, 128], strides = [1, 1]} : vector<2x128xf32> to vector<1x128xf32>
    %31 = arith.mulf %12, %29 : vector<1x128xf32>
    %32 = arith.subf %30, %31 : vector<1x128xf32>
    %33 = vector.broadcast %29 : vector<1x128xf32> to vector<256x128xf32>
    %34 = arith.mulf %8, %33 : vector<256x128xf32>
    %35 = vector.broadcast %32 : vector<1x128xf32> to vector<256x128xf32>
    %36 = arith.addf %34, %35 : vector<256x128xf32>
    %cst_13 = arith.constant 0.000000e+00 : f32
    %37 = vector.broadcast %cst_13 : f32 to vector<256x128xf32>
    %38 = arith.maximumf %36, %37 : vector<256x128xf32>
    %c0_14 = arith.constant 0 : index
    %c0_15 = arith.constant 0 : index
    %39 = vector.load %arg7[%c0_14, %c0_15] : memref<256x128xf32, #tpu.memory_space<vmem>>, vector<256x128xf32>
    tpu.vector_store %arg7[%c0_14, %c0_15], %38 {strides = array<i32>} : memref<256x128xf32, #tpu.memory_space<vmem>>, vector<256x128xf32>,
    %c1_i32 = arith.constant 1 : i32
    %c0_16 = arith.constant 0 : index
    %c0_17 = arith.constant 0 : index
    %40 = vector.load %arg7[%c0_16, %c0_17] : memref<256x128xf32, #tpu.memory_space<vmem>>, vector<256x128xf32>
    %41 = arith.truncf %40 : vector<256x128xf32> to vector<256x128xbf16>
    %42 = arith.index_cast %c1_i32 : i32 to index
    %c0_18 = arith.constant 0 : index
    %c0_19 = arith.constant 0 : index
    %43 = vector.load %arg2[%42, %c0_18, %c0_19] : memref<4x128x128xbf16, #tpu.memory_space<vmem>>, vector<1x128x128xbf16>
    %44 = vector.shape_cast %43 : vector<1x128x128xbf16> to vector<128x128xbf16>
    %cst_20 = arith.constant dense<0.000000e+00> : vector<256x128xf32>
    %45 = tpu.matmul %41, %44, %cst_20 {dimension_numbers = #tpu.dot_dimension_numbers<[1], [0], [0], [1], [0, 0, 1, 1], [], []>} : vector<256x128xbf16>, vector<128x128xbf16>, vector<256x128xf32> -> vector<256x128xf32>
    %cst_21 = arith.constant dense<0.000000e+00> : vector<128xf32>
    %46 = vector.multi_reduction <add>, %45, %cst_21 [0] : vector<256x128xf32> to vector<128xf32>
    %47 = vector.shape_cast %46 : vector<128xf32> to vector<1x128xf32>
    %cst_22 = arith.constant 2.560000e+02 : f32
    %48 = vector.broadcast %cst_22 : f32 to vector<1x128xf32>
    %49 = arith.divf %47, %48 : vector<1x128xf32>
    %50 = arith.mulf %45, %45 : vector<256x128xf32>
    %cst_23 = arith.constant dense<0.000000e+00> : vector<128xf32>
    %51 = vector.multi_reduction <add>, %50, %cst_23 [0] : vector<256x128xf32> to vector<128xf32>
    %52 = vector.shape_cast %51 : vector<128xf32> to vector<1x128xf32>
    %cst_24 = arith.constant 2.560000e+02 : f32
    %53 = vector.broadcast %cst_24 : f32 to vector<1x128xf32>
    %54 = arith.divf %52, %53 : vector<1x128xf32>
    %55 = arith.mulf %49, %49 : vector<1x128xf32>
    %56 = arith.subf %54, %55 : vector<1x128xf32>
    %cst_25 = arith.constant 0.000000e+00 : f32
    %57 = vector.broadcast %cst_25 : f32 to vector<1x128xf32>
    %58 = arith.maximumf %56, %57 : vector<1x128xf32>
    %59 = arith.index_cast %c1_i32 : i32 to index
    %c0_26 = arith.constant 0 : index
    %c0_27 = arith.constant 0 : index
    %60 = vector.load %arg3[%59, %c0_26, %c0_27] : memref<4x2x128xf32, #tpu.memory_space<vmem>>, vector<1x2x128xf32>
    %61 = vector.shape_cast %60 : vector<1x2x128xf32> to vector<2x128xf32>
    %62 = vector.extract_strided_slice %61 {offsets = [0, 0], sizes = [1, 128], strides = [1, 1]} : vector<2x128xf32> to vector<1x128xf32>
    %cst_28 = arith.constant 9.99999974E-6 : f32
    %63 = vector.broadcast %cst_28 : f32 to vector<1x128xf32>
    %64 = arith.addf %58, %63 : vector<1x128xf32>
    %65 = math.rsqrt %64 : vector<1x128xf32>
    %66 = arith.mulf %62, %65 : vector<1x128xf32>
    %67 = vector.extract_strided_slice %61 {offsets = [1, 0], sizes = [1, 128], strides = [1, 1]} : vector<2x128xf32> to vector<1x128xf32>
    %68 = arith.mulf %49, %66 : vector<1x128xf32>
    %69 = arith.subf %67, %68 : vector<1x128xf32>
    %70 = vector.broadcast %66 : vector<1x128xf32> to vector<256x128xf32>
    %71 = arith.mulf %45, %70 : vector<256x128xf32>
    %72 = vector.broadcast %69 : vector<1x128xf32> to vector<256x128xf32>
    %73 = arith.addf %71, %72 : vector<256x128xf32>
    %cst_29 = arith.constant 0.000000e+00 : f32
    %74 = vector.broadcast %cst_29 : f32 to vector<256x128xf32>
    %75 = arith.maximumf %73, %74 : vector<256x128xf32>
    %c0_30 = arith.constant 0 : index
    %c0_31 = arith.constant 0 : index
    %76 = vector.load %arg7[%c0_30, %c0_31] : memref<256x128xf32, #tpu.memory_space<vmem>>, vector<256x128xf32>
    tpu.vector_store %arg7[%c0_30, %c0_31], %75 {strides = array<i32>} : memref<256x128xf32, #tpu.memory_space<vmem>>, vector<256x128xf32>,
    %c2_i32 = arith.constant 2 : i32
    %c0_32 = arith.constant 0 : index
    %c0_33 = arith.constant 0 : index
    %77 = vector.load %arg7[%c0_32, %c0_33] : memref<256x128xf32, #tpu.memory_space<vmem>>, vector<256x128xf32>
    %78 = arith.truncf %77 : vector<256x128xf32> to vector<256x128xbf16>
    %79 = arith.index_cast %c2_i32 : i32 to index
    %c0_34 = arith.constant 0 : index
    %c0_35 = arith.constant 0 : index
    %80 = vector.load %arg2[%79, %c0_34, %c0_35] : memref<4x128x128xbf16, #tpu.memory_space<vmem>>, vector<1x128x128xbf16>
    %81 = vector.shape_cast %80 : vector<1x128x128xbf16> to vector<128x128xbf16>
    %cst_36 = arith.constant dense<0.000000e+00> : vector<256x128xf32>
    %82 = tpu.matmul %78, %81, %cst_36 {dimension_numbers = #tpu.dot_dimension_numbers<[1], [0], [0], [1], [0, 0, 1, 1], [], []>} : vector<256x128xbf16>, vector<128x128xbf16>, vector<256x128xf32> -> vector<256x128xf32>
    %cst_37 = arith.constant dense<0.000000e+00> : vector<128xf32>
    %83 = vector.multi_reduction <add>, %82, %cst_37 [0] : vector<256x128xf32> to vector<128xf32>
    %84 = vector.shape_cast %83 : vector<128xf32> to vector<1x128xf32>
    %cst_38 = arith.constant 2.560000e+02 : f32
    %85 = vector.broadcast %cst_38 : f32 to vector<1x128xf32>
    %86 = arith.divf %84, %85 : vector<1x128xf32>
    %87 = arith.mulf %82, %82 : vector<256x128xf32>
    %cst_39 = arith.constant dense<0.000000e+00> : vector<128xf32>
    %88 = vector.multi_reduction <add>, %87, %cst_39 [0] : vector<256x128xf32> to vector<128xf32>
    %89 = vector.shape_cast %88 : vector<128xf32> to vector<1x128xf32>
    %cst_40 = arith.constant 2.560000e+02 : f32
    %90 = vector.broadcast %cst_40 : f32 to vector<1x128xf32>
    %91 = arith.divf %89, %90 : vector<1x128xf32>
    %92 = arith.mulf %86, %86 : vector<1x128xf32>
    %93 = arith.subf %91, %92 : vector<1x128xf32>
    %cst_41 = arith.constant 0.000000e+00 : f32
    %94 = vector.broadcast %cst_41 : f32 to vector<1x128xf32>
    %95 = arith.maximumf %93, %94 : vector<1x128xf32>
    %96 = arith.index_cast %c2_i32 : i32 to index
    %c0_42 = arith.constant 0 : index
    %c0_43 = arith.constant 0 : index
    %97 = vector.load %arg3[%96, %c0_42, %c0_43] : memref<4x2x128xf32, #tpu.memory_space<vmem>>, vector<1x2x128xf32>
    %98 = vector.shape_cast %97 : vector<1x2x128xf32> to vector<2x128xf32>
    %99 = vector.extract_strided_slice %98 {offsets = [0, 0], sizes = [1, 128], strides = [1, 1]} : vector<2x128xf32> to vector<1x128xf32>
    %cst_44 = arith.constant 9.99999974E-6 : f32
    %100 = vector.broadcast %cst_44 : f32 to vector<1x128xf32>
    %101 = arith.addf %95, %100 : vector<1x128xf32>
    %102 = math.rsqrt %101 : vector<1x128xf32>
    %103 = arith.mulf %99, %102 : vector<1x128xf32>
    %104 = vector.extract_strided_slice %98 {offsets = [1, 0], sizes = [1, 128], strides = [1, 1]} : vector<2x128xf32> to vector<1x128xf32>
    %105 = arith.mulf %86, %103 : vector<1x128xf32>
    %106 = arith.subf %104, %105 : vector<1x128xf32>
    %107 = vector.broadcast %103 : vector<1x128xf32> to vector<256x128xf32>
    %108 = arith.mulf %82, %107 : vector<256x128xf32>
    %109 = vector.broadcast %106 : vector<1x128xf32> to vector<256x128xf32>
    %110 = arith.addf %108, %109 : vector<256x128xf32>
    %cst_45 = arith.constant 0.000000e+00 : f32
    %111 = vector.broadcast %cst_45 : f32 to vector<256x128xf32>
    %112 = arith.maximumf %110, %111 : vector<256x128xf32>
    %c0_46 = arith.constant 0 : index
    %c0_47 = arith.constant 0 : index
    %113 = vector.load %arg7[%c0_46, %c0_47] : memref<256x128xf32, #tpu.memory_space<vmem>>, vector<256x128xf32>
    tpu.vector_store %arg7[%c0_46, %c0_47], %112 {strides = array<i32>} : memref<256x128xf32, #tpu.memory_space<vmem>>, vector<256x128xf32>,
    %c3_i32 = arith.constant 3 : i32
    %c0_48 = arith.constant 0 : index
    %c0_49 = arith.constant 0 : index
    %114 = vector.load %arg7[%c0_48, %c0_49] : memref<256x128xf32, #tpu.memory_space<vmem>>, vector<256x128xf32>
    %115 = arith.truncf %114 : vector<256x128xf32> to vector<256x128xbf16>
    %116 = arith.index_cast %c3_i32 : i32 to index
    %c0_50 = arith.constant 0 : index
    %c0_51 = arith.constant 0 : index
    %117 = vector.load %arg2[%116, %c0_50, %c0_51] : memref<4x128x128xbf16, #tpu.memory_space<vmem>>, vector<1x128x128xbf16>
    %118 = vector.shape_cast %117 : vector<1x128x128xbf16> to vector<128x128xbf16>
    %cst_52 = arith.constant dense<0.000000e+00> : vector<256x128xf32>
    %119 = tpu.matmul %115, %118, %cst_52 {dimension_numbers = #tpu.dot_dimension_numbers<[1], [0], [0], [1], [0, 0, 1, 1], [], []>} : vector<256x128xbf16>, vector<128x128xbf16>, vector<256x128xf32> -> vector<256x128xf32>
    %cst_53 = arith.constant dense<0.000000e+00> : vector<128xf32>
    %120 = vector.multi_reduction <add>, %119, %cst_53 [0] : vector<256x128xf32> to vector<128xf32>
    %121 = vector.shape_cast %120 : vector<128xf32> to vector<1x128xf32>
    %cst_54 = arith.constant 2.560000e+02 : f32
    %122 = vector.broadcast %cst_54 : f32 to vector<1x128xf32>
    %123 = arith.divf %121, %122 : vector<1x128xf32>
    %124 = arith.mulf %119, %119 : vector<256x128xf32>
    %cst_55 = arith.constant dense<0.000000e+00> : vector<128xf32>
    %125 = vector.multi_reduction <add>, %124, %cst_55 [0] : vector<256x128xf32> to vector<128xf32>
    %126 = vector.shape_cast %125 : vector<128xf32> to vector<1x128xf32>
    %cst_56 = arith.constant 2.560000e+02 : f32
    %127 = vector.broadcast %cst_56 : f32 to vector<1x128xf32>
    %128 = arith.divf %126, %127 : vector<1x128xf32>
    %129 = arith.mulf %123, %123 : vector<1x128xf32>
    %130 = arith.subf %128, %129 : vector<1x128xf32>
    %cst_57 = arith.constant 0.000000e+00 : f32
    %131 = vector.broadcast %cst_57 : f32 to vector<1x128xf32>
    %132 = arith.maximumf %130, %131 : vector<1x128xf32>
    %133 = arith.index_cast %c3_i32 : i32 to index
    %c0_58 = arith.constant 0 : index
    %c0_59 = arith.constant 0 : index
    %134 = vector.load %arg3[%133, %c0_58, %c0_59] : memref<4x2x128xf32, #tpu.memory_space<vmem>>, vector<1x2x128xf32>
    %135 = vector.shape_cast %134 : vector<1x2x128xf32> to vector<2x128xf32>
    %136 = vector.extract_strided_slice %135 {offsets = [0, 0], sizes = [1, 128], strides = [1, 1]} : vector<2x128xf32> to vector<1x128xf32>
    %cst_60 = arith.constant 9.99999974E-6 : f32
    %137 = vector.broadcast %cst_60 : f32 to vector<1x128xf32>
    %138 = arith.addf %132, %137 : vector<1x128xf32>
    %139 = math.rsqrt %138 : vector<1x128xf32>
    %140 = arith.mulf %136, %139 : vector<1x128xf32>
    %141 = vector.extract_strided_slice %135 {offsets = [1, 0], sizes = [1, 128], strides = [1, 1]} : vector<2x128xf32> to vector<1x128xf32>
    %142 = arith.mulf %123, %140 : vector<1x128xf32>
    %143 = arith.subf %141, %142 : vector<1x128xf32>
    %144 = vector.broadcast %140 : vector<1x128xf32> to vector<256x128xf32>
    %145 = arith.mulf %119, %144 : vector<256x128xf32>
    %146 = vector.broadcast %143 : vector<1x128xf32> to vector<256x128xf32>
    %147 = arith.addf %145, %146 : vector<256x128xf32>
    %cst_61 = arith.constant 0.000000e+00 : f32
    %148 = vector.broadcast %cst_61 : f32 to vector<256x128xf32>
    %149 = arith.maximumf %147, %148 : vector<256x128xf32>
    %c0_62 = arith.constant 0 : index
    %c0_63 = arith.constant 0 : index
    %150 = vector.load %arg7[%c0_62, %c0_63] : memref<256x128xf32, #tpu.memory_space<vmem>>, vector<256x128xf32>
    tpu.vector_store %arg7[%c0_62, %c0_63], %149 {strides = array<i32>} : memref<256x128xf32, #tpu.memory_space<vmem>>, vector<256x128xf32>,
    %c4_i32 = arith.constant 4 : i32
    %c1_i32_64 = arith.constant 1 : i32
    %151 = arith.cmpi eq, %arg0, %c1_i32_64 : i32
    %152 = arith.extui %151 : i1 to i32
    %c0_i32_65 = arith.constant 0 : i32
    %153 = arith.cmpi ne, %152, %c0_i32_65 : i32
    scf.if %153 {
      %c0_66 = arith.constant 0 : index
      %c0_67 = arith.constant 0 : index
      %154 = vector.load %arg7[%c0_66, %c0_67] : memref<256x128xf32, #tpu.memory_space<vmem>>, vector<256x128xf32>
      %155 = arith.truncf %154 : vector<256x128xf32> to vector<256x128xbf16>
      %c0_68 = arith.constant 0 : index
      %c0_69 = arith.constant 0 : index
      %156 = vector.load %arg4[%c0_68, %c0_69] : memref<128x128xbf16, #tpu.memory_space<vmem>>, vector<128x128xbf16>
      %cst_70 = arith.constant dense<0.000000e+00> : vector<256x128xf32>
      %157 = tpu.matmul %155, %156, %cst_70 {dimension_numbers = #tpu.dot_dimension_numbers<[1], [0], [0], [1], [0, 0, 1, 1], [], []>} : vector<256x128xbf16>, vector<128x128xbf16>, vector<256x128xf32> -> vector<256x128xf32>
      %c0_71 = arith.constant 0 : index
      %c0_72 = arith.constant 0 : index
      %158 = vector.load %arg5[%c0_71, %c0_72] : memref<1x128xf32, #tpu.memory_space<vmem>>, vector<1x128xf32>
      %159 = vector.broadcast %158 : vector<1x128xf32> to vector<256x128xf32>
      %160 = arith.addf %157, %159 : vector<256x128xf32>
      %c0_73 = arith.constant 0 : index
      %c0_74 = arith.constant 0 : index
      %161 = vector.load %arg6[%c0_73, %c0_74] : memref<256x128xf32, #tpu.memory_space<vmem>>, vector<256x128xf32>
      tpu.vector_store %arg6[%c0_73, %c0_74], %160 {strides = array<i32>} : memref<256x128xf32, #tpu.memory_space<vmem>>, vector<256x128xf32>,
    } else {
    }
    return
  }
  func.func @transform_0(%arg0: i32) -> (i32, i32) {
    %c0_i32 = arith.constant 0 : i32
    %c0_i32_0 = arith.constant 0 : i32
    %c0_i32_1 = arith.constant 0 : i32
    return %c0_i32, %c0_i32_0 : i32, i32
  }
  func.func @transform_1(%arg0: i32) -> (i32, i32, i32) {
    %c0_i32 = arith.constant 0 : i32
    %c0_i32_0 = arith.constant 0 : i32
    %c0_i32_1 = arith.constant 0 : i32
    return %arg0, %c0_i32, %c0_i32_0 : i32, i32, i32
  }
  func.func @transform_2(%arg0: i32) -> (i32, i32, i32) {
    %c0_i32 = arith.constant 0 : i32
    %c0_i32_0 = arith.constant 0 : i32
    %c0_i32_1 = arith.constant 0 : i32
    return %arg0, %c0_i32, %c0_i32_0 : i32, i32, i32
  }
  func.func @transform_3(%arg0: i32) -> (i32, i32) {
    %c0_i32 = arith.constant 0 : i32
    %c0_i32_0 = arith.constant 0 : i32
    %c0_i32_1 = arith.constant 0 : i32
    return %c0_i32, %c0_i32_0 : i32, i32
  }
  func.func @transform_4(%arg0: i32) -> (i32, i32) {
    %c0_i32 = arith.constant 0 : i32
    %c0_i32_0 = arith.constant 0 : i32
    %c0_i32_1 = arith.constant 0 : i32
    return %c0_i32, %c0_i32_0 : i32, i32
  }
  func.func @transform_5(%arg0: i32) -> (i32, i32) {
    %c0_i32 = arith.constant 0 : i32
    %c0_i32_0 = arith.constant 0 : i32
    %c0_i32_1 = arith.constant 0 : i32
    return %c0_i32, %c0_i32_0 : i32, i32
  }
}

</mosaic_0001>

<bundles_post_ra>
// kernel: tpu_custom_call.1
= control target key start
LH: loop header
LB: loop body
LE: loop exit
PB: predicated region body
PF: predicated region fallthrough
CT: control target
= control target key end

     0   :  { %10 = vsyncpa [#allocation4], 0  ;;  %s5028_s0 = inlined_call_operand.hbm [shape: f32[256,128], index: 0, kind: input, shape index: {}]   ;;  %s5029_s1 = inlined_call_operand.hbm [shape: bf16[8,128,128], index: 1, kind: input, shape index: {}]   ;;  %s5030_s2 = inlined_call_operand.hbm [shape: f32[8,2,128], index: 2, kind: input, shape index: {}]   ;;  %s5031_s3 = inlined_call_operand.hbm [shape: bf16[128,128], index: 3, kind: input, shape index: {}]   ;;  %s5032_s4 = inlined_call_operand.vmem [shape: f32[1,128], index: 4, kind: input, shape index: {}]   ;;  %s5033_s5 = inlined_call_operand.hbm [shape: f32[256,128], index: 5, kind: output, shape index: {}]  }
   0x1   :  { %11 = vsyncpa [#allocation7], 0 }
   0x2   :  { %13 = vsyncpa [#allocation7 + $0x1], 0 }
   0x3   :  { %14 = vsyncpa [#allocation10], 0 }
   0x4   :  { %15 = vsyncpa [#allocation5], 0  ;;  %s3755_s18 = smov 0   ;;  %s3757_s19 = smov 0  }
   0x5   :  { %s3759_s20 = smov 0   ;;  %s3761_s21 = smov 0  }
   0x6 LB: > { %s3776_s22 = sadd.s32 1, %s3710_s21   ;;  %s49_s23 = sadd.s32 1, %s3706_s20  ;;  %s3710_s21 = sphi %s3761_s21, %s5052_s21   ;;  %s3706_s20 = sphi %s3759_s20, %s5051_s20   ;;  %s3702_s19 = sphi %s3757_s19, %s5050_s19   ;;  %s3698_s18 = sphi %s3755_s18, %s5049_s18  }
   0x7   : > { %s46_s24 = ssub.s32 %s3710_s21, %s3776_s22  ;;  %p56_p0 = scmp.ne.s32.totalorder %s3706_s20, %s3702_s19 }
   0x8   : > { %p47_p1 = scmp.eq.s32.totalorder %s46_s24, 0  ;;  %p57_p2 = scmp.eq.s32.totalorder %s3710_s21, 0 }
   0x9   : > { %p3436_p4 = scmp.lt.s32.totalorder %s3710_s21, 2  ;;  %s204_s26 = sand.u32 1, %s3710_s21  }
   0xa   : > { %s3785_s25 = scalar_select %p47_p1, %s3706_s20, %s49_s23  }
   0xb   : > { %p58_p3 = por %p57_p2, %p56_p0  ;;  %s206_s27 = sand.u32 1, %s3706_s20  }
   0xc   : > { %s2915_s28 = sshll.u32 %s206_s27, 8  ;;  %s3026_s29 = sshll.u32 %s3710_s21, 12 }
   0xd   : > { %s3794_s7 = scalar_lea.hbm %s5029_s1, %s3026_s29  ;;  %s208_s8 = scalar_lea.vmem [#allocation6], %s2915_s28 }
   0xe   : > { %s216_s9 = sshll.u32 %s208_s8, 4  ;;  %p3796_p5 = pnand %p3436_p4, %p58_p3  ;;  %s3800_s9 = int_to_ptr.vmem [resolvable:$true] %s216_s9 }
   0xf   : > { %s3802_s11 = sshll.u32 %s206_s27, 3  ;;  %s3804_s12 = scalar_lea.sflag [#allocation7], %s204_s26 }
  0x10   : > { %s3532_s13 = scalar_lea.hbm %s3794_s7, 4096  ;;  %p5035_p7 = pneg %p3796_p5 }
  0x11   : > { %p3533_p6 = scmp.ne.s32.totalorder %s3794_s7, %s3532_s13  ;;  %s3537_s16 = scalar_lea.hbm %s5029_s1, 8192 }
  0x12   : > { %p3538_p10 = scmp.lt.s32.totalorder %s3794_s7, %s5029_s1  ;;  %p3539_p11 = scmp.lt.s32.totalorder %s3537_s16, %s3532_s13 }
  0x13   : > { %p3535_p8 = pnand %p5035_p7, %p3533_p6 }
  0x14   : > { %p3540_p12 = por %p3539_p11, %p3538_p10 }
  0x15   : > { %p3536_p9 = pneg %p3535_p8 }
  0x17   : > { %p3541_p13 = pnand %p3540_p12, %p3536_p9 }
  0x19   : > { %3544 = shalt.err (!%p3541_p13)
}
  0x1a   : > { %s3545_s24 = scalar_lea.vmem %s3800_s9, 4096  ;;  %s3712_s26 = smov [#allocation6]  }
  0x1b   : > { %p3546_p0 = scmp.ne.s32.totalorder %s3800_s9, %s3545_s24  ;;  %s3550_s27 = sshll.u32 %s3712_s26, 4  ;;  %s3551_s27 = int_to_ptr.vmem [resolvable:$false] %s3550_s27 }
  0x1c   : > { %s3552_s28 = scalar_lea.vmem %s3551_s27, 8192  ;;  %p3553_p3 = scmp.lt.s32.totalorder %s3800_s9, %s3551_s27 }
  0x1d   : > { %p3548_p1 = pnand %p3546_p0, %p5035_p7  ;;  %p3554_p4 = scmp.lt.s32.totalorder %s3552_s28, %s3545_s24 }
  0x1f   : > { %p3549_p2 = pneg %p3548_p1  ;;  %p3555_p6 = por %p3554_p4, %p3553_p3 }
  0x21   : > { %p3556_p8 = pnand %p3555_p6, %p3549_p2 }
  0x23   : > { %3559 = shalt.err (!%p3556_p8)
}
  0x24   : > { %s3713_s29 = smov 64   ;;  %s3714_s30 = smov 4  }
  0x25   : > { %3430 = dma.hbm_to_vmem [thread:$0]  (!%p3796_p5), %s3794_s7, 4096, %s3800_s9, %s3804_s12, %s3713_s29, %s3713_s29, %s3714_s30  }
  0x26   : > { %s230_s6 = scalar_lea.vmem [#allocation8], %s3802_s11  ;;  %s3838_s13 = sadd.s32 4294967295, %s3710_s21  }
  0x27   : > { %s3835_s8 = sshll.u32 %s230_s6, 4  ;;  %p62_p9 = scmp.ne.s32.totalorder %s3702_s19, %s3698_s18  ;;  %s3892_s8 = int_to_ptr.vmem [resolvable:$true] %s3835_s8 }
  0x28   : > { %p5034_p10 = scmp.eq.s32.totalorder %s3838_s13, 0  ;;  %p2911_p11 = scmp.ge.s32.totalorder %s3710_s21, 1 }
  0x29   : > { %p162_p12 = scmp.lt.s32.totalorder %s3710_s21, 3  ;;  %s3715_s9 = smov [#allocation3]  }
  0x2a   : > { %p3847_p13 = por %p5034_p10, %p62_p9  ;;  %s174_s11 = sshll.u32 %s3715_s9, 4  ;;  %s175_s11 = int_to_ptr.vmem [resolvable:$true] %s174_s11 }
  0x2b   : > { %p3852_p1 = pnand %p2911_p11, %p162_p12  ;;  %s3716_s15 = smov [#allocation9]  }
  0x2c   : > { %s5038_s14 = scalar_select %p3847_p13, 1, 0 }
  0x2d   : > { %p3420_p2 = pneg %p3852_p1  ;;  %s187_s16 = sshll.u32 %s3716_s15, 4  ;;  %s188_s16 = int_to_ptr.vmem [resolvable:$true] %s187_s16 }
  0x2e   : > { %s3027_s17 = sshll.u32 %s3710_s21, 7  ;;  %s3571_s27 = scalar_lea.vmem %s175_s11, 4096 }
  0x2f   : > { %p3860_p3 = pnand %p3420_p2, %p5034_p10  ;;  %s3868_s26 = scalar_lea.hbm %s5030_s2, %s3027_s17 }
  0x30   : > { %p3572_p6 = scmp.ne.s32.totalorder %s175_s11, %s3571_s27  ;;  %p3579_p11 = scmp.lt.s32.totalorder %s175_s11, %s175_s11 }
  0x31   : > { %p3562_p4 = pneg %p3860_p3  ;;  %p3580_p12 = scmp.lt.s32.totalorder %s3571_s27, %s3571_s27 }
  0x33   : > { %p3574_p8 = pnand %p3572_p6, %p3562_p4  ;;  %p3581_p2 = por %p3580_p12, %p3579_p11 }
  0x35   : > { %p3575_p9 = pneg %p3574_p8 }
  0x37   : > { %p3582_p0 = pnand %p3581_p2, %p3575_p9 }
  0x39   : > { %3585 = shalt.err (!%p3582_p0)
}
  0x3a   : > { %s3717_s28 = smov 128   ;;  %s3718_s21 = smov 8  }
  0x3b   : > { %3423 = dma.hbm_to_vmem [thread:$0]  (!%p3860_p3), %s5028_s0, 4096, %s175_s11, [#allocation4], %s3717_s28, %s3717_s28, %s3718_s21  }
  0x3c   : > { %s3597_s15 = scalar_lea.vmem %s188_s16, 1024  ;;  %p3605_p7 = scmp.lt.s32.totalorder %s188_s16, %s188_s16 }
  0x3d   : > { %p3598_p10 = scmp.ne.s32.totalorder %s188_s16, %s3597_s15  ;;  %p3606_p13 = scmp.lt.s32.totalorder %s3597_s15, %s3597_s15 }
  0x3f   : > { %p3600_p6 = pnand %p3598_p10, %p3562_p4  ;;  %p3607_p11 = por %p3606_p13, %p3605_p7 }
  0x41   : > { %p3601_p8 = pneg %p3600_p6 }
  0x43   : > { %p3608_p9 = pnand %p3607_p11, %p3601_p8 }
  0x45   : > { %3611 = shalt.err (!%p3608_p9)
}
  0x46   : > { %3426 = dma.hbm_to_vmem [thread:$0]  (!%p3860_p3), %s5031_s3, 1024, %s188_s16, [#allocation10], %s3713_s29, %s3713_s29, %s3714_s30  }
  0x47   : > { %s3612_s11 = scalar_lea.hbm %s3868_s26, 128  ;;  %p5041_p10 = pneg %p3796_p5 }
  0x48   : > { %p3613_p7 = scmp.ne.s32.totalorder %s3868_s26, %s3612_s11  ;;  %s3617_s27 = scalar_lea.hbm %s5030_s2, 256 }
  0x49   : > { %p3618_p4 = scmp.lt.s32.totalorder %s3868_s26, %s5030_s2  ;;  %p3619_p12 = scmp.lt.s32.totalorder %s3617_s27, %s3612_s11 }
  0x4a   : > { %p3615_p13 = pnand %p3613_p7, %p5041_p10 }
  0x4b   : > { %p3620_p2 = por %p3619_p12, %p3618_p4 }
  0x4c   : > { %p3616_p0 = pneg %p3615_p13 }
  0x4e   : > { %p3621_p6 = pnand %p3620_p2, %p3616_p0 }
  0x50   : > { %3624 = shalt.err (!%p3621_p6)
}
  0x51   : > { %s3625_s29 = scalar_lea.vmem %s3892_s8, 128  ;;  %p5042_p8 = pmov %p5041_p10 }
  0x52   : > { %p3626_p3 = scmp.ne.s32.totalorder %s3892_s8, %s3625_s29  ;;  %s3719_s30 = smov [#allocation8]  }
  0x53   : > { %s3630_s16 = sshll.u32 %s3719_s30, 4  ;;  %s3631_s16 = int_to_ptr.vmem [resolvable:$false] %s3630_s16 }
  0x54   : > { %p3628_p11 = pnand %p3626_p3, %p5042_p8  ;;  %s3632_s6 = scalar_lea.vmem %s3631_s16, 256 }
  0x55   : > { %p3633_p7 = scmp.lt.s32.totalorder %s3892_s8, %s3631_s16  ;;  %p3634_p10 = scmp.lt.s32.totalorder %s3632_s6, %s3625_s29 }
  0x56   : > { %p3629_p9 = pneg %p3628_p11 }
  0x57   : > { %p3635_p13 = por %p3634_p10, %p3633_p7 }
  0x59   : > { %p3636_p4 = pnand %p3635_p13, %p3629_p9 }
  0x5b   : > { %3639 = shalt.err (!%p3636_p4)
}
  0x5c   : > { %s3720_s9 = smov 32   ;;  %s3721_s15 = smov 2  }
  0x5d   : > { %3433 = dma.hbm_to_vmem [thread:$0]  (!%p3796_p5), %s3868_s26, 128, %s3892_s8, %s3804_s12, %s3720_s9, %s3720_s9, %s3721_s15  }
  0x5e   : > { %249 = sbr.rel (%p3852_p1) target bundleno = 1719 (0x6b7), region = 40  ;;  %p5043_p0 = scmp.eq.s32.totalorder (!%p3852_p1), %s3838_s13, 0 }
  0x63   : > { %3681 = dma.done.wait (%p5043_p0), [#allocation4], 4096   ;;  %p5044_p12 = pmov %p5043_p0 }
  0x64   : > { %s255_s17 = sand.u32 1, %s3838_s13   ;;  %s257_s23 = sand.u32 1, %s3702_s19  }
  0x65   : > { %3683 = vsyncadd (%p5044_p12), [#allocation4], 4294963200  ;;  %s2924_s11 = sshll.u32 %s257_s23, 8  ;;  %s256_s18 = scalar_lea.sflag [#allocation7], %s255_s17 }
  0x66   : > { %s3925_s24 = scalar_lea.vmem [#allocation6], %s2924_s11  ;;  %p5045_p2 = scmp.ne.s32.totalorder %s5038_s14, 0 }
  0x68   : > { %3685 = dma.done.wait (%p5045_p2), %s256_s18, 4224  }
  0x69   : > { %3687 = vsyncadd (%p5045_p2), %s256_s18, 4294963072  ;;  %s2925_s10 = sshll.u32 %s257_s23, 3  ;;  %p5046_p5 = pmov %p5043_p0 }
  0x6a   : > { %s3931_s12 = scalar_lea.vmem [#allocation8], %s2925_s10 }
  0x6b   : > { %3689 = dma.done.wait (%p5046_p5), [#allocation10], 1024   ;;  %p5047_p1 = pmov %p5043_p0 }
  0x6c   : > { %p5048_p6 = scmp.ne.s32.totalorder %s3838_s13, 0 }
  0x6d   : > { %3691 = vsyncadd (%p5047_p1), [#allocation10], 4294966272 }
  0x6e   : > { %305 = sbr.rel (%p5048_p6) target bundleno = 132 (0x84), region = 60 }
  0x73   : > { %v306_v0 = vld [vmem:[#allocation3] sm:$0xff]  ;;  %v307_v1 = vld [vmem:[#allocation3 + $0x8] sm:$0xff]  ;;  %v308_v2 = vld [vmem:[#allocation3 + $0x10] sm:$0xff] }
  0x74   : > { %338 = vst [vmem:[#allocation2 + $0xb0] sm:$0xff] %v306_v0  ;;  %339 = vst [vmem:[#allocation2] sm:$0xff] %v307_v1  ;;  %v309_v3 = vld [vmem:[#allocation3 + $0x18] sm:$0xff]  ;;  %v310_v4 = vld [vmem:[#allocation3 + $0x20] sm:$0xff] }
  0x75   : > { %340 = vst [vmem:[#allocation2 + $0xd8] sm:$0xff] %v308_v2  ;;  %v311_v5 = vld [vmem:[#allocation3 + $0x28] sm:$0xff]  ;;  %341 = vst [vmem:[#allocation2 + $0x18] sm:$0xff] %v309_v3  ;;  %v312_v6 = vld [vmem:[#allocation3 + $0x30] sm:$0xff] }
  0x76   : > { %342 = vst [vmem:[#allocation2 + $0x50] sm:$0xff] %v310_v4  ;;  %343 = vst [vmem:[#allocation2 + $0x68] sm:$0xff] %v311_v5  ;;  %v313_v7 = vld [vmem:[#allocation3 + $0x38] sm:$0xff]  ;;  %v314_v8 = vld [vmem:[#allocation3 + $0x40] sm:$0xff] }
  0x77   : > { %344 = vst [vmem:[#allocation2 + $0x30] sm:$0xff] %v312_v6  ;;  %345 = vst [vmem:[#allocation2 + $0x48] sm:$0xff] %v313_v7  ;;  %v315_v9 = vld [vmem:[#allocation3 + $0x48] sm:$0xff]  ;;  %v316_v10 = vld [vmem:[#allocation3 + $0x50] sm:$0xff] }
  0x78   : > { %346 = vst [vmem:[#allocation2 + $0x80] sm:$0xff] %v314_v8  ;;  %v317_v11 = vld [vmem:[#allocation3 + $0x58] sm:$0xff]  ;;  %347 = vst [vmem:[#allocation2 + $0x88] sm:$0xff] %v315_v9  ;;  %v318_v12 = vld [vmem:[#allocation3 + $0x60] sm:$0xff] }
  0x79   : > { %348 = vst [vmem:[#allocation2 + $0xe8] sm:$0xff] %v316_v10  ;;  %349 = vst [vmem:[#allocation2 + $0xb8] sm:$0xff] %v317_v11  ;;  %v319_v13 = vld [vmem:[#allocation3 + $0x68] sm:$0xff]  ;;  %v320_v14 = vld [vmem:[#allocation3 + $0x70] sm:$0xff] }
  0x7a   : > { %350 = vst [vmem:[#allocation2 + $0x60] sm:$0xff] %v318_v12  ;;  %351 = vst [vmem:[#allocation2 + $0xf0] sm:$0xff] %v319_v13  ;;  %v321_v15 = vld [vmem:[#allocation3 + $0x78] sm:$0xff]  ;;  %v322_v16 = vld [vmem:[#allocation3 + $0x80] sm:$0xff] }
  0x7b   : > { %352 = vst [vmem:[#allocation2 + $0x8] sm:$0xff] %v320_v14  ;;  %v323_v17 = vld [vmem:[#allocation3 + $0x88] sm:$0xff]  ;;  %353 = vst [vmem:[#allocation2 + $0x78] sm:$0xff] %v321_v15  ;;  %v324_v18 = vld [vmem:[#allocation3 + $0x90] sm:$0xff] }
  0x7c   : > { %354 = vst [vmem:[#allocation2 + $0x38] sm:$0xff] %v322_v16  ;;  %355 = vst [vmem:[#allocation2 + $0x58] sm:$0xff] %v323_v17  ;;  %v325_v19 = vld [vmem:[#allocation3 + $0x98] sm:$0xff]  ;;  %v326_v20 = vld [vmem:[#allocation3 + $0xa0] sm:$0xff] }
  0x7d   : > { %356 = vst [vmem:[#allocation2 + $0x40] sm:$0xff] %v324_v18  ;;  %357 = vst [vmem:[#allocation2 + $0xc8] sm:$0xff] %v325_v19  ;;  %v327_v21 = vld [vmem:[#allocation3 + $0xa8] sm:$0xff]  ;;  %v328_v22 = vld [vmem:[#allocation3 + $0xb0] sm:$0xff] }
  0x7e   : > { %358 = vst [vmem:[#allocation2 + $0xe0] sm:$0xff] %v326_v20  ;;  %v329_v23 = vld [vmem:[#allocation3 + $0xb8] sm:$0xff]  ;;  %359 = vst [vmem:[#allocation2 + $0x90] sm:$0xff] %v327_v21  ;;  %v330_v24 = vld [vmem:[#allocation3 + $0xc0] sm:$0xff] }
  0x7f   : > { %360 = vst [vmem:[#allocation2 + $0x70] sm:$0xff] %v328_v22  ;;  %361 = vst [vmem:[#allocation2 + $0xc0] sm:$0xff] %v329_v23  ;;  %v331_v25 = vld [vmem:[#allocation3 + $0xc8] sm:$0xff]  ;;  %v332_v26 = vld [vmem:[#allocation3 + $0xd0] sm:$0xff] }
  0x80   : > { %362 = vst [vmem:[#allocation2 + $0xa8] sm:$0xff] %v330_v24  ;;  %363 = vst [vmem:[#allocation2 + $0xd0] sm:$0xff] %v331_v25  ;;  %v333_v27 = vld [vmem:[#allocation3 + $0xd8] sm:$0xff]  ;;  %v334_v28 = vld [vmem:[#allocation3 + $0xe0] sm:$0xff] }
  0x81   : > { %364 = vst [vmem:[#allocation2 + $0x10] sm:$0xff] %v332_v26  ;;  %v335_v29 = vld [vmem:[#allocation3 + $0xe8] sm:$0xff]  ;;  %365 = vst [vmem:[#allocation2 + $0x28] sm:$0xff] %v333_v27  ;;  %v336_v30 = vld [vmem:[#allocation3 + $0xf0] sm:$0xff] }
  0x82   : > { %366 = vst [vmem:[#allocation2 + $0xa0] sm:$0xff] %v334_v28  ;;  %367 = vst [vmem:[#allocation2 + $0xf8] sm:$0xff] %v335_v29  ;;  %v337_v31 = vld [vmem:[#allocation3 + $0xf8] sm:$0xff] }
  0x83   : > { %368 = vst [vmem:[#allocation2 + $0x20] sm:$0xff] %v336_v30  ;;  %369 = vst [vmem:[#allocation2 + $0x98] sm:$0xff] %v337_v31 }
  0x84 PF: > { %v3484_v32 = vld [vmem:[%s3925_s24 + $0x38] sm:$0xff]   ;;  %v3485_v33 = vld [vmem:[%s3925_s24 + $0x30] sm:$0xff]   ;;  %v3486_v34 = vld [vmem:[%s3925_s24 + $0x28] sm:$0xff]   ;;  %p3011_p3 = scmp.ne.s32.totalorder %s3838_s13, 1 }
  0x85   : > { %3148 = vmatprep.subr.bf16.mxu0 %v3484_v32  ;;  %v3487_v35 = vld [vmem:[%s3925_s24 + $0x20] sm:$0xff]   ;;  %v370_v36 = vld [vmem:[#allocation2 + $0xb0] sm:$0xff]  ;;  %v3488_v39 = vld [vmem:[%s3925_s24 + $0x18] sm:$0xff]  }
  0x86   : > { %3149 = vmatpush3.bf16.msra.mxu0 %v3484_v32  ;;  %v371_v37 = vld [vmem:[#allocation2] sm:$0xff]  ;;  %v3489_v40 = vld [vmem:[%s3925_s24 + $0x10] sm:$0xff]   ;;  %v3490_v41 = vld [vmem:[%s3925_s24 + $0x8] sm:$0xff]  }
  0x87   : > { %3150 = vmatprep.subr.bf16.mxu0 %v3485_v33  ;;  %v402_v38 = vpack.c.bf16 %v371_v37, %v370_v36  ;;  %v3491_v42 = vld [vmem:[%s3925_s24] sm:$0xff]   ;;  %v372_v43 = vld [vmem:[#allocation2 + $0xd8] sm:$0xff]  ;;  %v374_v45 = vld [vmem:[#allocation2 + $0x50] sm:$0xff] }
  0x88   : > { %v373_v44 = vld [vmem:[#allocation2 + $0x18] sm:$0xff]  ;;  %v375_v46 = vld [vmem:[#allocation2 + $0x68] sm:$0xff]  ;;  %v376_v49 = vld [vmem:[#allocation2 + $0x30] sm:$0xff] }
  0x89   : > { %3164 = vmatprep.mubr.bf16.mxu0 %v402_v38  ;;  %v403_v47 = vpack.c.bf16 %v373_v44, %v372_v43  ;;  %v404_v48 = vpack.c.bf16 %v375_v46, %v374_v45  ;;  %v377_v50 = vld [vmem:[#allocation2 + $0x48] sm:$0xff]  ;;  %v378_v51 = vld [vmem:[#allocation2 + $0x80] sm:$0xff]  ;;  %v381_v56 = vld [vmem:[#allocation2 + $0xb8] sm:$0xff] }
  0x8a   : > { %3151 = vmatpush3.bf16.msra.mxu0 %v3485_v33  ;;  %v379_v52 = vld [vmem:[#allocation2 + $0x88] sm:$0xff]  ;;  %v405_v53 = vpack.c.bf16 %v377_v50, %v376_v49  ;;  %v382_v57 = vld [vmem:[#allocation2 + $0x60] sm:$0xff]  ;;  %v383_v58 = vld [vmem:[#allocation2 + $0xf0] sm:$0xff] }
  0x8b   : > { %3152 = vmatprep.subr.bf16.mxu0 %v3486_v34  ;;  %v406_v54 = vpack.c.bf16 %v379_v52, %v378_v51  ;;  %v380_v55 = vld [vmem:[#allocation2 + $0xe8] sm:$0xff]  ;;  %v408_v60 = vpack.c.bf16 %v383_v58, %v382_v57  ;;  %v385_v62 = vld [vmem:[#allocation2 + $0x78] sm:$0xff]  ;;  %v388_v3 = vld [vmem:[#allocation2 + $0x40] sm:$0xff] }
  0x8c   : > { %v407_v59 = vpack.c.bf16 %v381_v56, %v380_v55  ;;  %v384_v61 = vld [vmem:[#allocation2 + $0x8] sm:$0xff]  ;;  %v386_v63 = vld [vmem:[#allocation2 + $0x38] sm:$0xff]  ;;  %v390_v5 = vld [vmem:[#allocation2 + $0xe0] sm:$0xff] }
  0x8d   : > { %v387_v0 = vld [vmem:[#allocation2 + $0x58] sm:$0xff]  ;;  %v409_v1 = vpack.c.bf16 %v385_v62, %v384_v61  ;;  %v389_v4 = vld [vmem:[#allocation2 + $0xc8] sm:$0xff]  ;;  %v391_v6 = vld [vmem:[#allocation2 + $0x90] sm:$0xff] }
  0x8e   : > { %3153 = vmatpush3.bf16.msra.mxu0 %v3486_v34  ;;  %v410_v2 = vpack.c.bf16 %v387_v0, %v386_v63  ;;  %v411_v7 = vpack.c.bf16 %v389_v4, %v388_v3  ;;  %v412_v8 = vpack.c.bf16 %v391_v6, %v390_v5  ;;  %v392_v9 = vld [vmem:[#allocation2 + $0x70] sm:$0xff]  ;;  %v393_v10 = vld [vmem:[#allocation2 + $0xc0] sm:$0xff]  ;;  %v394_v11 = vld [vmem:[#allocation2 + $0xa8] sm:$0xff] }
  0x8f   : > { %3154 = vmatprep.subr.bf16.mxu0 %v3487_v35  ;;  %v395_v12 = vld [vmem:[#allocation2 + $0xd0] sm:$0xff]  ;;  %v413_v13 = vpack.c.bf16 %v393_v10, %v392_v9  ;;  %v397_v16 = vld [vmem:[#allocation2 + $0x28] sm:$0xff]  ;;  %v398_v17 = vld [vmem:[#allocation2 + $0xa0] sm:$0xff] }
  0x90   : > { %v414_v14 = vpack.c.bf16 %v395_v12, %v394_v11  ;;  %v396_v15 = vld [vmem:[#allocation2 + $0x10] sm:$0xff]  ;;  %v399_v18 = vld [vmem:[#allocation2 + $0xf8] sm:$0xff]  ;;  %v400_v21 = vld [vmem:[#allocation2 + $0x20] sm:$0xff] }
  0x91   : > { %v415_v19 = vpack.c.bf16 %v397_v16, %v396_v15  ;;  %v416_v20 = vpack.c.bf16 %v399_v18, %v398_v17  ;;  %v401_v22 = vld [vmem:[#allocation2 + $0x98] sm:$0xff]  ;;  %v3493_v25 = vld [vmem:[%s3925_s24 + $0x70] sm:$0xff]   ;;  %v3494_v26 = vld [vmem:[%s3925_s24 + $0x68] sm:$0xff]  }
  0x92   : > { %3155 = vmatpush3.bf16.msra.mxu0 %v3487_v35  ;;  %v417_v23 = vpack.c.bf16 %v401_v22, %v400_v21  ;;  %v3492_v24 = vld [vmem:[%s3925_s24 + $0x78] sm:$0xff]   ;;  %v3495_v27 = vld [vmem:[%s3925_s24 + $0x60] sm:$0xff]   ;;  %v3497_v29 = vld [vmem:[%s3925_s24 + $0x50] sm:$0xff]  }
  0x93   : > { %3156 = vmatprep.subr.bf16.mxu0 %v3488_v39  ;;  %3196 = vmatprep.subr.bf16.mxu1 %v3492_v24  ;;  %v3496_v28 = vld [vmem:[%s3925_s24 + $0x58] sm:$0xff]   ;;  %v3498_v31 = vld [vmem:[%s3925_s24 + $0x48] sm:$0xff]   ;;  %v3499_v34 = vld [vmem:[%s3925_s24 + $0x40] sm:$0xff]  }
  0x94   : > { %3197 = vmatpush3.bf16.msra.mxu1 %v3492_v24 }
  0x95   : > { %3198 = vmatprep.subr.bf16.mxu1 %v3493_v25 }
  0x96   : > { %3157 = vmatpush3.bf16.msra.mxu0 %v3488_v39 }
  0x97   : > { %3158 = vmatprep.subr.bf16.mxu0 %v3489_v40 }
  0x98   : > { %3199 = vmatpush3.bf16.msra.mxu1 %v3493_v25 }
  0x99   : > { %3200 = vmatprep.subr.bf16.mxu1 %v3494_v26 }
  0x9a   : > { %3159 = vmatpush3.bf16.msra.mxu0 %v3489_v40 }
  0x9b   : > { %3160 = vmatprep.subr.bf16.mxu0 %v3490_v41 }
  0x9c   : > { %3201 = vmatpush3.bf16.msra.mxu1 %v3494_v26 }
  0x9d   : > { %3202 = vmatprep.subr.bf16.mxu1 %v3495_v27 }
  0x9e   : > { %3161 = vmatpush3.bf16.msra.mxu0 %v3490_v41 }
  0x9f   : > { %3162 = vmatprep.subr.bf16.mxu0 %v3491_v42 }
  0xa0   : > { %3203 = vmatpush3.bf16.msra.mxu1 %v3495_v27 }
  0xa1   : > { %3204 = vmatprep.subr.bf16.mxu1 %v3496_v28 }
  0xa2   : > { %3163 = vmatpush3.bf16.msra.mxu0 %v3491_v42 }
  0xa4   : > { %3205 = vmatpush3.bf16.msra.mxu1 %v3496_v28 }
  0xa5   : > { %3165 = vmatmul.mubr.bf16.vlgmr.msra.gmra.mxu0 %v403_v47  ;;  %3206 = vmatprep.subr.bf16.mxu1 %v3497_v29 }
  0xa6   : > { %3168 = vmatprep.mubr.bf16.mxu0 %v404_v48 }
  0xa8   : > { %3207 = vmatpush3.bf16.msra.mxu1 %v3497_v29 }
  0xa9   : > { %3208 = vmatprep.subr.bf16.mxu1 %v3498_v31 }
  0xac   : > { %3209 = vmatpush3.bf16.msra.mxu1 %v3498_v31 }
  0xad   : > { %3169 = vmatmul.mubr.bf16.gmra.mxu0 %v405_v53  ;;  %3210 = vmatprep.subr.bf16.mxu1 %v3499_v34 }
  0xae   : > { %3172 = vmatprep.mubr.bf16.mxu0 %v406_v54 }
  0xb0   : > { %3211 = vmatpush3.bf16.msra.mxu1 %v3499_v34 }
  0xb5   : > { %3173 = vmatmul.mubr.bf16.gmra.mxu0 %v407_v59 }
  0xb6   : > { %3176 = vmatprep.mubr.bf16.mxu0 %v408_v60 }
  0xbd   : > { %3177 = vmatmul.mubr.bf16.gmra.mxu0 %v409_v1 }
  0xbe   : > { %3180 = vmatprep.mubr.bf16.mxu0 %v410_v2 }
  0xc5   : > { %3181 = vmatmul.mubr.bf16.gmra.mxu0 %v411_v7 }
  0xc6   : > { %3184 = vmatprep.mubr.bf16.mxu0 %v412_v8 }
  0xcd   : > { %3185 = vmatmul.mubr.bf16.gmra.mxu0 %v413_v13 }
  0xce   : > { %3188 = vmatprep.mubr.bf16.mxu0 %v414_v14 }
  0xd5   : > { %3189 = vmatmul.mubr.bf16.gmra.mxu0 %v415_v19 }
  0xd6   : > { %3192 = vmatprep.mubr.bf16.mxu0 %v416_v20 }
  0xdd   : > { %3193 = vmatmul.mubr.bf16.gmra.mxu0 %v417_v23 }
 0x165   : > { %v3953_v30 = vpop.f32.mrf.mxu0 }
 0x166   : > { %v684_v40 = vmul.f32 %v3953_v30, %v3953_v30 }
 0x167   : > { %v3956_v32 = vpop.f32.mrf.mxu0 }
 0x168   : > { %v682_v36 = vmul.f32 %v3956_v32, %v3956_v32 }
 0x169   : > { %v3958_v33 = vpop.f32.mrf.mxu0 }
 0x16a   : > { %v685_v44 = vmul.f32 %v3958_v33, %v3958_v33 }
 0x16b   : > { %v3961_v35 = vpop.f32.mrf.mxu0 }
 0x16c   : > { %v643_v37 = vadd.f32 %v3961_v35, %v3956_v32  ;;  %v683_v38 = vmul.f32 %v3961_v35, %v3961_v35 }
 0x16d   : > { %v3969_v39 = vpop.f32.mrf.mxu0 }
 0x16e   : > { %v644_v41 = vadd.f32 %v3953_v30, %v643_v37  ;;  %v714_v42 = vadd.f32 %v683_v38, %v682_v36  ;;  %v688_v56 = vmul.f32 %v3969_v39, %v3969_v39 }
 0x16f   : > { %v3974_v43 = vpop.f32.mrf.mxu0 }
 0x170   : > { %v715_v45 = vadd.f32 %v714_v42, %v684_v40  ;;  %v645_v46 = vadd.f32 %v3958_v33, %v644_v41  ;;  %v686_v49 = vmul.f32 %v3974_v43, %v3974_v43 }
 0x171   : > { %v3979_v47 = vpop.f32.mrf.mxu0 }
 0x172   : > { %v646_v48 = vadd.f32 %v645_v46, %v3974_v43  ;;  %v716_v50 = vadd.f32 %v715_v45, %v685_v44  ;;  %v689_v60 = vmul.f32 %v3979_v47, %v3979_v47 }
 0x173   : > { %v3984_v51 = vpop.f32.mrf.mxu0 }
 0x174   : > { %v717_v52 = vadd.f32 %v716_v50, %v686_v49  ;;  %v647_v53 = vadd.f32 %v646_v48, %v3984_v51  ;;  %v687_v54 = vmul.f32 %v3984_v51, %v3984_v51 }
 0x175   : > { %v3989_v55 = vpop.f32.mrf.mxu0 }
 0x176   : > { %v648_v57 = vadd.f32 %v3969_v39, %v647_v53  ;;  %v718_v58 = vadd.f32 %v717_v52, %v687_v54  ;;  %v692_v8 = vmul.f32 %v3989_v55, %v3989_v55 }
 0x177   : > { %v3994_v59 = vpop.f32.mrf.mxu0 }
 0x178   : > { %v719_v61 = vadd.f32 %v718_v58, %v688_v56  ;;  %v649_v62 = vadd.f32 %v3979_v47, %v648_v57  ;;  %v690_v1 = vmul.f32 %v3994_v59, %v3994_v59 }
 0x179   : > { %v3999_v63 = vpop.f32.mrf.mxu0 }
 0x17a   : > { %v650_v0 = vadd.f32 %v649_v62, %v3994_v59  ;;  %v720_v2 = vadd.f32 %v719_v61, %v689_v60  ;;  %v693_v12 = vmul.f32 %v3999_v63, %v3999_v63 }
 0x17b   : > { %v4004_v3 = vpop.f32.mrf.mxu0 }
 0x17c   : > { %v721_v4 = vadd.f32 %v720_v2, %v690_v1  ;;  %v651_v5 = vadd.f32 %v650_v0, %v4004_v3  ;;  %v691_v6 = vmul.f32 %v4004_v3, %v4004_v3 }
 0x17d   : > { %v4009_v7 = vpop.f32.mrf.mxu0 }
 0x17e   : > { %v652_v9 = vadd.f32 %v3989_v55, %v651_v5  ;;  %v722_v10 = vadd.f32 %v721_v4, %v691_v6  ;;  %v696_v24 = vmul.f32 %v4009_v7, %v4009_v7 }
 0x17f   : > { %v4014_v11 = vpop.f32.mrf.mxu0 }
 0x180   : > { %v723_v13 = vadd.f32 %v722_v10, %v692_v8  ;;  %v653_v14 = vadd.f32 %v3999_v63, %v652_v9  ;;  %v694_v17 = vmul.f32 %v4014_v11, %v4014_v11 }
 0x181   : > { %v4019_v15 = vpop.f32.mrf.mxu0 }
 0x182   : > { %v654_v16 = vadd.f32 %v653_v14, %v4014_v11  ;;  %v724_v18 = vadd.f32 %v723_v13, %v693_v12  ;;  %v697_v28 = vmul.f32 %v4019_v15, %v4019_v15 }
 0x183   : > { %v4024_v19 = vpop.f32.mrf.mxu0 }
 0x184   : > { %v725_v20 = vadd.f32 %v724_v18, %v694_v17  ;;  %v655_v21 = vadd.f32 %v654_v16, %v4024_v19  ;;  %v695_v22 = vmul.f32 %v4024_v19, %v4024_v19 }
 0x185   : > { %v4029_v23 = vpop.f32.mrf.mxu0 }
 0x186   : > { %v656_v25 = vadd.f32 %v4009_v7, %v655_v21  ;;  %v726_v26 = vadd.f32 %v725_v20, %v695_v22  ;;  %v700_v46 = vmul.f32 %v4029_v23, %v4029_v23 }
 0x187   : > { %v4034_v27 = vpop.f32.mrf.mxu0 }
 0x188   : > { %v727_v29 = vadd.f32 %v726_v26, %v696_v24  ;;  %v657_v31 = vadd.f32 %v4019_v15, %v656_v25  ;;  %v698_v37 = vmul.f32 %v4034_v27, %v4034_v27 }
 0x189   : > { %v4039_v34 = vpop.f32.mrf.mxu0 }
 0x18a   : > { %v658_v36 = vadd.f32 %v657_v31, %v4034_v27  ;;  %v728_v38 = vadd.f32 %v727_v29, %v697_v28  ;;  %v701_v52 = vmul.f32 %v4039_v34, %v4039_v34 }
 0x18b   : > { %v4044_v40 = vpop.f32.mrf.mxu0 }
 0x18c   : > { %v729_v41 = vadd.f32 %v728_v38, %v698_v37  ;;  %v659_v42 = vadd.f32 %v658_v36, %v4044_v40  ;;  %v699_v44 = vmul.f32 %v4044_v40, %v4044_v40 }
 0x18d   : > { %v4049_v45 = vpop.f32.mrf.mxu0 }
 0x18e   : > { %v660_v48 = vadd.f32 %v4029_v23, %v659_v42  ;;  %v730_v49 = vadd.f32 %v729_v41, %v699_v44  ;;  %v704_v4 = vmul.f32 %v4049_v45, %v4049_v45 }
 0x18f   : > { %v4054_v50 = vpop.f32.mrf.mxu0 }
 0x190   : > { %v731_v53 = vadd.f32 %v730_v49, %v700_v46  ;;  %v661_v54 = vadd.f32 %v4039_v34, %v660_v48  ;;  %v702_v58 = vmul.f32 %v4054_v50, %v4054_v50 }
 0x191   : > { %v4059_v56 = vpop.f32.mrf.mxu0 }
 0x192   : > { %v662_v57 = vadd.f32 %v661_v54, %v4054_v50  ;;  %v732_v60 = vadd.f32 %v731_v53, %v701_v52  ;;  %v705_v9 = vmul.f32 %v4059_v56, %v4059_v56 }
 0x193   : > { %v4064_v61 = vpop.f32.mrf.mxu0 }
 0x194   : > { %v733_v62 = vadd.f32 %v732_v60, %v702_v58  ;;  %v663_v0 = vadd.f32 %v662_v57, %v4064_v61  ;;  %v703_v1 = vmul.f32 %v4064_v61, %v4064_v61 }
 0x195   : > { %v4069_v2 = vpop.f32.mrf.mxu0 }
 0x196   : > { %v664_v5 = vadd.f32 %v4049_v45, %v663_v0  ;;  %v734_v6 = vadd.f32 %v733_v62, %v703_v1  ;;  %v708_v25 = vmul.f32 %v4069_v2, %v4069_v2 }
 0x197   : > { %v4074_v8 = vpop.f32.mrf.mxu0 }
 0x198   : > { %v735_v10 = vadd.f32 %v734_v6, %v704_v4  ;;  %v665_v12 = vadd.f32 %v4059_v56, %v664_v5  ;;  %v706_v16 = vmul.f32 %v4074_v8, %v4074_v8 }
 0x199   : > { %v4079_v13 = vpop.f32.mrf.mxu0 }
 0x19a   : > { %v666_v14 = vadd.f32 %v665_v12, %v4074_v8  ;;  %v736_v17 = vadd.f32 %v735_v10, %v705_v9  ;;  %v709_v31 = vmul.f32 %v4079_v13, %v4079_v13 }
 0x19b   : > { %v4084_v18 = vpop.f32.mrf.mxu0 }
 0x19c   : > { %v737_v20 = vadd.f32 %v736_v17, %v706_v16  ;;  %v667_v21 = vadd.f32 %v666_v14, %v4084_v18  ;;  %v707_v22 = vmul.f32 %v4084_v18, %v4084_v18 }
 0x19d   : > { %v4089_v24 = vpop.f32.mrf.mxu0 }
 0x19e   : > { %v668_v26 = vadd.f32 %v4069_v2, %v667_v21  ;;  %v738_v28 = vadd.f32 %v737_v20, %v707_v22  ;;  %v712_v53 = vmul.f32 %v4089_v24, %v4089_v24 }
 0x19f   : > { %v4094_v29 = vpop.f32.mrf.mxu0 }
 0x1a0   : > { %v739_v36 = vadd.f32 %v738_v28, %v708_v25  ;;  %v669_v37 = vadd.f32 %v4079_v13, %v668_v26  ;;  %v710_v42 = vmul.f32 %v4094_v29, %v4094_v29 }
 0x1a1   : > { %v3195_v38 = vpop.f32.mrf.mxu0 }
 0x1a2   : > { %v670_v41 = vadd.f32 %v669_v37, %v4094_v29  ;;  %v740_v44 = vadd.f32 %v739_v36, %v709_v31  ;;  %v713_v58 = vmul.f32 %v3195_v38, %v3195_v38  ;;  %v755_v37 = vld [vmem:[%s3931_s12] sm:$0x3] }
 0x1a3   : > { %v4102_v46 = vpop.f32.mrf.mxu0 }
 0x1a4   : > { %v741_v48 = vadd.f32 %v740_v44, %v710_v42  ;;  %v671_v49 = vadd.f32 %v670_v41, %v4102_v46  ;;  %v711_v52 = vmul.f32 %v4102_v46, %v4102_v46  ;;  %v764_v44 = vlaneseq }
 0x1a6   : > { %v672_v54 = vadd.f32 %v4089_v24, %v671_v49  ;;  %v742_v57 = vadd.f32 %v741_v48, %v711_v52  ;;  %v765_v49 = vshrl.u32 %v764_v44, 7 }
 0x1a8   : > { %v673_v60 = vadd.f32 %v3195_v38, %v672_v54  ;;  %v743_v62 = vadd.f32 %v742_v57, %v712_v53  ;;  %v4111_v53 = vsub.s32 0, %v765_v49  ;;  %v4113_v57 = vsub.s32 1, %v765_v49 }
 0x1aa   : > { %v674_v0 = vrot.slane %v673_v60, 4  ;;  %v744_v1 = vadd.f32 %v743_v62, %v713_v58 }
 0x1ac   : > { %v675_v4 = vadd.f32 %v674_v0, %v673_v60  ;;  %v745_v5 = vrot.slane %v744_v1, 4 }
 0x1ae   : > { %v676_v6 = vrot.slane %v675_v4, 2  ;;  %v746_v9 = vadd.f32 %v745_v5, %v744_v1 }
 0x1b0   : > { %v677_v10 = vadd.f32 %v676_v6, %v675_v4  ;;  %v747_v12 = vrot.slane %v746_v9, 2 }
 0x1b2   : > { %v678_v14 = vrot.slane %v677_v10, 1  ;;  %v748_v16 = vadd.f32 %v747_v12, %v746_v9 }
 0x1b4   : > { %v679_v17 = vadd.f32 %v678_v14, %v677_v10  ;;  %v749_v20 = vrot.slane %v748_v16, 1 }
 0x1b6   : > { %v681_v21 = vmul.f32 0.00390625, %v679_v17  ;;  %v750_v22 = vadd.f32 %v749_v20, %v748_v16 }
 0x1b8   : > { %v751_v25 = vmul.f32 0.00390625, %v750_v22  ;;  %v752_v26 = vmul.f32 %v681_v21, %v681_v21 }
 0x1ba   : > { %v753_v28 = vsub.f32 %v751_v25, %v752_v26 }
 0x1bc   : > { %v754_v31 = vmax.f32 %v753_v28, 0.0 }
 0x1be   : > { %v756_v36 = vadd.f32 1e-05, %v754_v31 }
 0x1c0   : > { %3516 = vrsqrt.f32 %v756_v36 }
 0x1cd   : > { %v3517_v41 = vpop.eup %3516 }
 0x1ce   : > { %v758_v42 = vmul.f32 %v3517_v41, %v755_v37 }
 0x1d0   : > { %v759_v48 = vmul.f32 %v758_v42, %v681_v21  ;;  %v4116_v58 = vrot.slane %v758_v42, %v4111_v53 }
 0x1d2   : > { %v761_v52 = vrot.slane %v759_v48, 7  ;;  %v768_v62 = vmul.f32 %v4116_v58, %v3956_v32  ;;  %v769_v0 = vmul.f32 %v4116_v58, %v3961_v35  ;;  %v770_v1 = vmul.f32 %v3953_v30, %v4116_v58 }
 0x1d3   : > { %v771_v4 = vmul.f32 %v3958_v33, %v4116_v58  ;;  %v772_v5 = vmul.f32 %v4116_v58, %v3974_v43  ;;  %v773_v6 = vmul.f32 %v4116_v58, %v3984_v51  ;;  %v798_v30 = vmul.f32 %v4089_v24, %v4116_v58 }
 0x1d4   : > { %v763_v54 = vsub.f32 %v755_v37, %v761_v52  ;;  %v799_v12 = vmul.f32 %v3195_v38, %v4116_v58  ;;  %v774_v26 = vmul.f32 %v3969_v39, %v4116_v58  ;;  %v775_v24 = vmul.f32 %v3979_v47, %v4116_v58 }
 0x1d5   : > { %v776_v38 = vmul.f32 %v4116_v58, %v3994_v59  ;;  %v777_v28 = vmul.f32 %v4116_v58, %v4004_v3 }
 0x1d6   : > { %v4119_v60 = vrot.slane %v763_v54, %v4113_v57 }
 0x1d8   : > { %v804_v9 = vadd.f32 %v4119_v60, %v768_v62  ;;  %v805_v10 = vadd.f32 %v4119_v60, %v769_v0  ;;  %v806_v32 = vadd.f32 %v4119_v60, %v770_v1  ;;  %v807_v35 = vadd.f32 %v4119_v60, %v771_v4 }
 0x1d9   : > { %v808_v33 = vadd.f32 %v4119_v60, %v772_v5  ;;  %v809_v43 = vadd.f32 %v4119_v60, %v773_v6  ;;  %v834_v14 = vadd.f32 %v4119_v60, %v798_v30  ;;  %v835_v51 = vadd.f32 %v4119_v60, %v799_v12 }
 0x1da   : > { %v836_v16 = vmax.f32 %v804_v9, 0.0  ;;  %v837_v17 = vmax.f32 %v805_v10, 0.0  ;;  %v838_v20 = vmax.f32 %v806_v32, 0.0  ;;  %v839_v21 = vmax.f32 %v807_v35, 0.0 }
 0x1db   : > { %v840_v22 = vmax.f32 %v808_v33, 0.0  ;;  %v841_v25 = vmax.f32 %v809_v43, 0.0  ;;  %v866_v31 = vmax.f32 %v834_v14, 0.0  ;;  %v867_v36 = vmax.f32 %v835_v51, 0.0 }
 0x1dc   : > { %v932_v37 = vpack.c.bf16 %v837_v17, %v836_v16  ;;  %v810_v41 = vadd.f32 %v4119_v60, %v774_v26  ;;  %v811_v42 = vadd.f32 %v4119_v60, %v775_v24  ;;  %v933_v44 = vpack.c.bf16 %v839_v21, %v838_v20 }
 0x1dd   : > { %v812_v48 = vadd.f32 %v4119_v60, %v776_v38  ;;  %v813_v39 = vadd.f32 %v4119_v60, %v777_v28  ;;  %v934_v47 = vpack.c.bf16 %v841_v25, %v840_v22  ;;  %v4156_v59 = vpack.c.bf16 %v867_v36, %v866_v31 }
 0x1de   : > { %3212 = vmatprep.mubr.bf16.mxu1 %v932_v37  ;;  %v842_v49 = vmax.f32 %v810_v41, 0.0  ;;  %v843_v3 = vmax.f32 %v811_v42, 0.0  ;;  %v778_v62 = vmul.f32 %v3989_v55, %v4116_v58  ;;  %v779_v0 = vmul.f32 %v3999_v63, %v4116_v58 }
 0x1df   : > { %3213 = vmatmul.mubr.bf16.vlgmr.msra.gmra.mxu1 %v933_v44  ;;  %v844_v52 = vmax.f32 %v812_v48, 0.0  ;;  %v845_v54 = vmax.f32 %v813_v39, 0.0  ;;  %v780_v1 = vmul.f32 %v4116_v58, %v4014_v11  ;;  %v781_v4 = vmul.f32 %v4116_v58, %v4024_v19 }
 0x1e0   : > { %3216 = vmatprep.mubr.bf16.mxu1 %v934_v47  ;;  %v814_v5 = vadd.f32 %v4119_v60, %v778_v62  ;;  %v815_v6 = vadd.f32 %v4119_v60, %v779_v0  ;;  %v935_v9 = vpack.c.bf16 %v843_v3, %v842_v49  ;;  %v782_v11 = vmul.f32 %v4009_v7, %v4116_v58 }
 0x1e1   : > { %v816_v10 = vadd.f32 %v4119_v60, %v780_v1  ;;  %v817_v32 = vadd.f32 %v4119_v60, %v781_v4  ;;  %v936_v35 = vpack.c.bf16 %v845_v54, %v844_v52  ;;  %v783_v19 = vmul.f32 %v4019_v15, %v4116_v58 }
 0x1e2   : > { %v846_v55 = vmax.f32 %v814_v5, 0.0  ;;  %v847_v63 = vmax.f32 %v815_v6, 0.0  ;;  %v784_v33 = vmul.f32 %v4116_v58, %v4034_v27  ;;  %v785_v43 = vmul.f32 %v4116_v58, %v4044_v40 }
 0x1e3   : > { %v848_v30 = vmax.f32 %v816_v10, 0.0  ;;  %v849_v12 = vmax.f32 %v817_v32, 0.0  ;;  %v818_v14 = vadd.f32 %v4119_v60, %v782_v11  ;;  %v819_v51 = vadd.f32 %v4119_v60, %v783_v19  ;;  %v3503_v11 = vld [vmem:[%s3925_s24 + $0xa0] sm:$0xff]   ;;  %v3504_v19 = vld [vmem:[%s3925_s24 + $0x98] sm:$0xff]  }
 0x1e4   : > { %v937_v16 = vpack.c.bf16 %v847_v63, %v846_v55  ;;  %v820_v17 = vadd.f32 %v4119_v60, %v784_v33  ;;  %v821_v20 = vadd.f32 %v4119_v60, %v785_v43  ;;  %v786_v27 = vmul.f32 %v4029_v23, %v4116_v58  ;;  %v3505_v33 = vld [vmem:[%s3925_s24 + $0x90] sm:$0xff]   ;;  %v3506_v43 = vld [vmem:[%s3925_s24 + $0x88] sm:$0xff]  }
 0x1e5   : > { %v938_v21 = vpack.c.bf16 %v849_v12, %v848_v30  ;;  %v850_v7 = vmax.f32 %v818_v14, 0.0  ;;  %v851_v15 = vmax.f32 %v819_v51, 0.0  ;;  %v787_v40 = vmul.f32 %v4039_v34, %v4116_v58  ;;  %v3500_v30 = vld [vmem:[%s3925_s24 + $0xb8] sm:$0xff]   ;;  %v3502_v12 = vld [vmem:[%s3925_s24 + $0xa8] sm:$0xff]  }
 0x1e6   : > { %v852_v22 = vmax.f32 %v820_v17, 0.0  ;;  %v853_v25 = vmax.f32 %v821_v20, 0.0  ;;  %v788_v26 = vmul.f32 %v4116_v58, %v4054_v50  ;;  %v789_v24 = vmul.f32 %v4116_v58, %v4064_v61  ;;  %3244 = vmatprep.subr.bf16.mxu0 %v3500_v30 }
 0x1e7   : > { %3217 = vmatmul.mubr.bf16.gmra.mxu1 %v935_v9  ;;  %v822_v38 = vadd.f32 %v4119_v60, %v786_v27  ;;  %v823_v28 = vadd.f32 %v4119_v60, %v787_v40  ;;  %v939_v31 = vpack.c.bf16 %v851_v15, %v850_v7  ;;  %v790_v50 = vmul.f32 %v4049_v45, %v4116_v58 }
 0x1e8   : > { %3220 = vmatprep.mubr.bf16.mxu1 %v936_v35  ;;  %v824_v36 = vadd.f32 %v4119_v60, %v788_v26  ;;  %v825_v37 = vadd.f32 %v4119_v60, %v789_v24  ;;  %v940_v41 = vpack.c.bf16 %v853_v25, %v852_v22  ;;  %v791_v61 = vmul.f32 %v4059_v56, %v4116_v58 }
 0x1e9   : > { %v854_v23 = vmax.f32 %v822_v38, 0.0  ;;  %v855_v34 = vmax.f32 %v823_v28, 0.0  ;;  %v792_v48 = vmul.f32 %v4116_v58, %v4074_v8  ;;  %v793_v39 = vmul.f32 %v4116_v58, %v4084_v18  ;;  %3245 = vmatpush3.bf16.msra.mxu0 %v3500_v30 }
 0x1ea   : > { %v856_v42 = vmax.f32 %v824_v36, 0.0  ;;  %v857_v44 = vmax.f32 %v825_v37, 0.0  ;;  %v826_v47 = vadd.f32 %v4119_v60, %v790_v50  ;;  %v827_v49 = vadd.f32 %v4119_v60, %v791_v61 }
 0x1eb   : > { %v941_v3 = vpack.c.bf16 %v855_v34, %v854_v23  ;;  %v828_v52 = vadd.f32 %v4119_v60, %v792_v48  ;;  %v829_v54 = vadd.f32 %v4119_v60, %v793_v39  ;;  %v794_v8 = vmul.f32 %v4069_v2, %v4116_v58 }
 0x1ec   : > { %v942_v62 = vpack.c.bf16 %v857_v44, %v856_v42  ;;  %v858_v45 = vmax.f32 %v826_v47, 0.0  ;;  %v859_v56 = vmax.f32 %v827_v49, 0.0  ;;  %v795_v18 = vmul.f32 %v4079_v13, %v4116_v58 }
 0x1ed   : > { %v860_v0 = vmax.f32 %v828_v52, 0.0  ;;  %v861_v1 = vmax.f32 %v829_v54, 0.0  ;;  %v797_v4 = vmul.f32 %v4116_v58, %v4102_v46  ;;  %v796_v5 = vmul.f32 %v4116_v58, %v4094_v29 }
 0x1ee   : > { %v830_v6 = vadd.f32 %v4119_v60, %v794_v8  ;;  %v831_v9 = vadd.f32 %v4119_v60, %v795_v18  ;;  %v943_v10 = vpack.c.bf16 %v859_v56, %v858_v45 }
 0x1ef   : > { %3221 = vmatmul.mubr.bf16.gmra.mxu1 %v937_v16  ;;  %v833_v32 = vadd.f32 %v4119_v60, %v797_v4  ;;  %v832_v35 = vadd.f32 %v4119_v60, %v796_v5  ;;  %v944_v2 = vpack.c.bf16 %v861_v1, %v860_v0  ;;  %v3501_v60 = vld [vmem:[%s3925_s24 + $0xb0] sm:$0xff]   ;;  %v3507_v16 = vld [vmem:[%s3925_s24 + $0x80] sm:$0xff]  }
 0x1f0   : > { %3224 = vmatprep.mubr.bf16.mxu1 %v938_v21  ;;  %v862_v13 = vmax.f32 %v830_v6, 0.0  ;;  %v863_v46 = vmax.f32 %v831_v9, 0.0  ;;  %3246 = vmatprep.subr.bf16.mxu0 %v3501_v60 }
 0x1f1   : > { %v865_v55 = vmax.f32 %v833_v32, 0.0  ;;  %v864_v29 = vmax.f32 %v832_v35, 0.0  ;;  %3247 = vmatpush3.bf16.msra.mxu0 %v3501_v60 }
 0x1f2   : > { %v945_v58 = vpack.c.bf16 %v863_v46, %v862_v13  ;;  %3248 = vmatprep.subr.bf16.mxu0 %v3502_v12 }
 0x1f3   : > { %v946_v63 = vpack.c.bf16 %v865_v55, %v864_v29 }
 0x1f5   : > { %3249 = vmatpush3.bf16.msra.mxu0 %v3502_v12 }
 0x1f6   : > { %3250 = vmatprep.subr.bf16.mxu0 %v3503_v11 }
 0x1f7   : > { %3225 = vmatmul.mubr.bf16.gmra.mxu1 %v939_v31 }
 0x1f8   : > { %3228 = vmatprep.mubr.bf16.mxu1 %v940_v41 }
 0x1f9   : > { %3251 = vmatpush3.bf16.msra.mxu0 %v3503_v11 }
 0x1fa   : > { %3252 = vmatprep.subr.bf16.mxu0 %v3504_v19 }
 0x1fd   : > { %3253 = vmatpush3.bf16.msra.mxu0 %v3504_v19 }
 0x1fe   : > { %3254 = vmatprep.subr.bf16.mxu0 %v3505_v33 }
 0x1ff   : > { %3229 = vmatmul.mubr.bf16.gmra.mxu1 %v941_v3 }
 0x200   : > { %3232 = vmatprep.mubr.bf16.mxu1 %v942_v62 }
 0x201   : > { %3255 = vmatpush3.bf16.msra.mxu0 %v3505_v33 }
 0x202   : > { %3256 = vmatprep.subr.bf16.mxu0 %v3506_v43 }
 0x205   : > { %3257 = vmatpush3.bf16.msra.mxu0 %v3506_v43 }
 0x206   : > { %3258 = vmatprep.subr.bf16.mxu0 %v3507_v16 }
 0x207   : > { %3233 = vmatmul.mubr.bf16.gmra.mxu1 %v943_v10 }
 0x208   : > { %3236 = vmatprep.mubr.bf16.mxu1 %v944_v2 }
 0x209   : > { %3259 = vmatpush3.bf16.msra.mxu0 %v3507_v16 }
 0x20f   : > { %3237 = vmatmul.mubr.bf16.gmra.mxu1 %v945_v58 }
 0x210   : > { %3240 = vmatprep.mubr.bf16.mxu1 %v946_v63 }
 0x217   : > { %3241 = vmatmul.mubr.bf16.gmra.mxu1 %v4156_v59 }
 0x29f   : > { %v4225_v59 = vpop.f32.mrf.mxu1 }
 0x2a0   : > { %v1214_v22 = vmul.f32 %v4225_v59, %v4225_v59 }
 0x2a1   : > { %v4228_v14 = vpop.f32.mrf.mxu1 }
 0x2a2   : > { %v1212_v20 = vmul.f32 %v4228_v14, %v4228_v14 }
 0x2a3   : > { %v4230_v51 = vpop.f32.mrf.mxu1 }
 0x2a4   : > { %v1215_v26 = vmul.f32 %v4230_v51, %v4230_v51 }
 0x2a5   : > { %v4233_v17 = vpop.f32.mrf.mxu1 }
 0x2a6   : > { %v1174_v21 = vadd.f32 %v4233_v17, %v4228_v14  ;;  %v1213_v7 = vmul.f32 %v4233_v17, %v4233_v17 }
 0x2a7   : > { %v4241_v15 = vpop.f32.mrf.mxu1 }
 0x2a8   : > { %v1175_v25 = vadd.f32 %v4225_v59, %v1174_v21  ;;  %v1244_v27 = vadd.f32 %v1213_v7, %v1212_v20  ;;  %v1218_v50 = vmul.f32 %v4241_v15, %v4241_v15 }
 0x2a9   : > { %v4246_v40 = vpop.f32.mrf.mxu1 }
 0x2aa   : > { %v1245_v24 = vadd.f32 %v1244_v27, %v1214_v22  ;;  %v1176_v38 = vadd.f32 %v4230_v51, %v1175_v25  ;;  %v1216_v36 = vmul.f32 %v4246_v40, %v4246_v40 }
 0x2ab   : > { %v4251_v28 = vpop.f32.mrf.mxu1 }
 0x2ac   : > { %v1177_v31 = vadd.f32 %v1176_v38, %v4246_v40  ;;  %v1246_v37 = vadd.f32 %v1245_v24, %v1215_v26  ;;  %v1219_v47 = vmul.f32 %v4251_v28, %v4251_v28 }
 0x2ad   : > { %v4256_v41 = vpop.f32.mrf.mxu1 }
 0x2ae   : > { %v1247_v23 = vadd.f32 %v1246_v37, %v1216_v36  ;;  %v1178_v34 = vadd.f32 %v1177_v31, %v4256_v41  ;;  %v1217_v42 = vmul.f32 %v4256_v41, %v4256_v41 }
 0x2af   : > { %v4261_v44 = vpop.f32.mrf.mxu1 }
 0x2b0   : > { %v1179_v61 = vadd.f32 %v4241_v15, %v1178_v34  ;;  %v1248_v48 = vadd.f32 %v1247_v23, %v1217_v42  ;;  %v1222_v4 = vmul.f32 %v4261_v44, %v4261_v44 }
 0x2b1   : > { %v4266_v39 = vpop.f32.mrf.mxu1 }
 0x2b2   : > { %v1249_v49 = vadd.f32 %v1248_v48, %v1218_v50  ;;  %v1180_v3 = vadd.f32 %v4251_v28, %v1179_v61  ;;  %v1220_v62 = vmul.f32 %v4266_v39, %v4266_v39 }
 0x2b3   : > { %v4271_v52 = vpop.f32.mrf.mxu1 }
 0x2b4   : > { %v1181_v54 = vadd.f32 %v1180_v3, %v4266_v39  ;;  %v1250_v45 = vadd.f32 %v1249_v49, %v1219_v47  ;;  %v1223_v10 = vmul.f32 %v4271_v52, %v4271_v52 }
 0x2b5   : > { %v4276_v56 = vpop.f32.mrf.mxu1 }
 0x2b6   : > { %v1251_v0 = vadd.f32 %v1250_v45, %v1220_v62  ;;  %v1182_v1 = vadd.f32 %v1181_v54, %v4276_v56  ;;  %v1221_v8 = vmul.f32 %v4276_v56, %v4276_v56 }
 0x2b7   : > { %v4281_v18 = vpop.f32.mrf.mxu1 }
 0x2b8   : > { %v1183_v5 = vadd.f32 %v4261_v44, %v1182_v1  ;;  %v1252_v6 = vadd.f32 %v1251_v0, %v1221_v8  ;;  %v1226_v12 = vmul.f32 %v4281_v18, %v4281_v18 }
 0x2b9   : > { %v4286_v9 = vpop.f32.mrf.mxu1 }
 0x2ba   : > { %v1253_v32 = vadd.f32 %v1252_v6, %v1222_v4  ;;  %v1184_v35 = vadd.f32 %v4271_v52, %v1183_v5  ;;  %v1224_v46 = vmul.f32 %v4286_v9, %v4286_v9 }
 0x2bb   : > { %v4291_v2 = vpop.f32.mrf.mxu1 }
 0x2bc   : > { %v1185_v13 = vadd.f32 %v1184_v35, %v4286_v9  ;;  %v1254_v55 = vadd.f32 %v1253_v32, %v1223_v10  ;;  %v1227_v43 = vmul.f32 %v4291_v2, %v4291_v2 }
 0x2bd   : > { %v4296_v29 = vpop.f32.mrf.mxu1 }
 0x2be   : > { %v1255_v58 = vadd.f32 %v1254_v55, %v1224_v46  ;;  %v1186_v63 = vadd.f32 %v1185_v13, %v4296_v29  ;;  %v1225_v30 = vmul.f32 %v4296_v29, %v4296_v29 }
 0x2bf   : > { %v4301_v60 = vpop.f32.mrf.mxu1 }
 0x2c0   : > { %v1187_v11 = vadd.f32 %v4281_v18, %v1186_v63  ;;  %v1256_v19 = vadd.f32 %v1255_v58, %v1225_v30  ;;  %v1230_v36 = vmul.f32 %v4301_v60, %v4301_v60 }
 0x2c1   : > { %v4306_v33 = vpop.f32.mrf.mxu1 }
 0x2c2   : > { %v1257_v16 = vadd.f32 %v1256_v19, %v1226_v12  ;;  %v1188_v20 = vadd.f32 %v4291_v2, %v1187_v11  ;;  %v1228_v22 = vmul.f32 %v4306_v33, %v4306_v33 }
 0x2c3   : > { %v4311_v21 = vpop.f32.mrf.mxu1 }
 0x2c4   : > { %v1189_v7 = vadd.f32 %v1188_v20, %v4306_v33  ;;  %v1258_v25 = vadd.f32 %v1257_v16, %v1227_v43  ;;  %v1231_v42 = vmul.f32 %v4311_v21, %v4311_v21 }
 0x2c5   : > { %v4316_v27 = vpop.f32.mrf.mxu1 }
 0x2c6   : > { %v1259_v26 = vadd.f32 %v1258_v25, %v1228_v22  ;;  %v1190_v24 = vadd.f32 %v1189_v7, %v4316_v27  ;;  %v1229_v38 = vmul.f32 %v4316_v27, %v4316_v27 }
 0x2c7   : > { %v4321_v31 = vpop.f32.mrf.mxu1 }
 0x2c8   : > { %v1191_v37 = vadd.f32 %v4301_v60, %v1190_v24  ;;  %v1260_v23 = vadd.f32 %v1259_v26, %v1229_v38  ;;  %v1234_v8 = vmul.f32 %v4321_v31, %v4321_v31 }
 0x2c9   : > { %v4326_v34 = vpop.f32.mrf.mxu1 }
 0x2ca   : > { %v1261_v50 = vadd.f32 %v1260_v23, %v1230_v36  ;;  %v1192_v61 = vadd.f32 %v4311_v21, %v1191_v37  ;;  %v1232_v49 = vmul.f32 %v4326_v34, %v4326_v34 }
 0x2cb   : > { %v4331_v48 = vpop.f32.mrf.mxu1 }
 0x2cc   : > { %v1193_v47 = vadd.f32 %v1192_v61, %v4326_v34  ;;  %v1262_v3 = vadd.f32 %v1261_v50, %v1231_v42  ;;  %v1235_v10 = vmul.f32 %v4331_v48, %v4331_v48 }
 0x2cd   : > { %v4336_v54 = vpop.f32.mrf.mxu1 }
 0x2ce   : > { %v1263_v62 = vadd.f32 %v1262_v3, %v1232_v49  ;;  %v1194_v45 = vadd.f32 %v1193_v47, %v4336_v54  ;;  %v1233_v0 = vmul.f32 %v4336_v54, %v4336_v54 }
 0x2cf   : > { %v4341_v1 = vpop.f32.mrf.mxu1 }
 0x2d0   : > { %v1195_v4 = vadd.f32 %v4321_v31, %v1194_v45  ;;  %v1264_v5 = vadd.f32 %v1263_v62, %v1233_v0  ;;  %v1238_v43 = vmul.f32 %v4341_v1, %v4341_v1 }
 0x2d1   : > { %v4346_v6 = vpop.f32.mrf.mxu1 }
 0x2d2   : > { %v1265_v32 = vadd.f32 %v1264_v5, %v1234_v8  ;;  %v1196_v35 = vadd.f32 %v4331_v48, %v1195_v4  ;;  %v1236_v55 = vmul.f32 %v4346_v6, %v4346_v6 }
 0x2d3   : > { %v4351_v13 = vpop.f32.mrf.mxu1 }
 0x2d4   : > { %v1197_v46 = vadd.f32 %v1196_v35, %v4346_v6  ;;  %v1266_v58 = vadd.f32 %v1265_v32, %v1235_v10  ;;  %v1239_v22 = vmul.f32 %v4351_v13, %v4351_v13 }
 0x2d5   : > { %v4356_v63 = vpop.f32.mrf.mxu1 }
 0x2d6   : > { %v1267_v30 = vadd.f32 %v1266_v58, %v1236_v55  ;;  %v1198_v12 = vadd.f32 %v1197_v46, %v4356_v63  ;;  %v1237_v11 = vmul.f32 %v4356_v63, %v4356_v63 }
 0x2d7   : > { %v3242_v19 = vpop.f32.mrf.mxu1 }
 0x2d8   : > { %v1199_v16 = vadd.f32 %v4341_v1, %v1198_v12  ;;  %v1268_v20 = vadd.f32 %v1267_v30, %v1237_v11  ;;  %v1242_v47 = vmul.f32 %v3242_v19, %v3242_v19 }
 0x2d9   : > { %v4364_v7 = vpop.f32.mrf.mxu1 }
 0x2da   : > { %v1269_v25 = vadd.f32 %v1268_v20, %v1238_v43  ;;  %v1200_v26 = vadd.f32 %v4351_v13, %v1199_v16  ;;  %v1240_v36 = vmul.f32 %v4364_v7, %v4364_v7 }
 0x2db   : > { %v3243_v24 = vpop.f32.mrf.mxu1 }
 0x2dc   : > { %v1201_v38 = vadd.f32 %v1200_v26, %v4364_v7  ;;  %v1270_v37 = vadd.f32 %v1269_v25, %v1239_v22  ;;  %v1243_v62 = vmul.f32 %v3243_v24, %v3243_v24 }
 0x2dd   : > { %v4372_v23 = vpop.f32.mrf.mxu1 }
 0x2de   : > { %v1271_v42 = vadd.f32 %v1270_v37, %v1240_v36  ;;  %v1202_v50 = vadd.f32 %v1201_v38, %v4372_v23  ;;  %v1241_v61 = vmul.f32 %v4372_v23, %v4372_v23  ;;  %v2960_v36 = vld [vmem:[%s3931_s12 + $0x2] sm:$0x3] }
 0x2e0   : > { %v1203_v49 = vadd.f32 %v3242_v19, %v1202_v50  ;;  %v1272_v3 = vadd.f32 %v1271_v42, %v1241_v61 }
 0x2e2   : > { %v1204_v45 = vadd.f32 %v3243_v24, %v1203_v49  ;;  %v1273_v0 = vadd.f32 %v1272_v3, %v1242_v47 }
 0x2e4   : > { %v1205_v8 = vrot.slane %v1204_v45, 4  ;;  %v1274_v4 = vadd.f32 %v1273_v0, %v1243_v62 }
 0x2e6   : > { %v1206_v5 = vadd.f32 %v1205_v8, %v1204_v45  ;;  %v1275_v10 = vrot.slane %v1274_v4, 4 }
 0x2e8   : > { %v1207_v32 = vrot.slane %v1206_v5, 2  ;;  %v1276_v35 = vadd.f32 %v1275_v10, %v1274_v4 }
 0x2ea   : > { %v1208_v46 = vadd.f32 %v1207_v32, %v1206_v5  ;;  %v1277_v55 = vrot.slane %v1276_v35, 2 }
 0x2ec   : > { %v1209_v58 = vrot.slane %v1208_v46, 1  ;;  %v1278_v30 = vadd.f32 %v1277_v55, %v1276_v35 }
 0x2ee   : > { %v1210_v12 = vadd.f32 %v1209_v58, %v1208_v46  ;;  %v1279_v11 = vrot.slane %v1278_v30, 1 }
 0x2f0   : > { %v1211_v43 = vmul.f32 0.00390625, %v1210_v12  ;;  %v1280_v16 = vadd.f32 %v1279_v11, %v1278_v30 }
 0x2f2   : > { %v1281_v20 = vmul.f32 0.00390625, %v1280_v16  ;;  %v1282_v22 = vmul.f32 %v1211_v43, %v1211_v43 }
 0x2f4   : > { %v1283_v25 = vsub.f32 %v1281_v20, %v1282_v22 }
 0x2f6   : > { %v1284_v26 = vmax.f32 %v1283_v25, 0.0 }
 0x2f8   : > { %v1287_v38 = vadd.f32 1e-05, %v1284_v26 }
 0x2fa   : > { %3518 = vrsqrt.f32 %v1287_v38 }
 0x307   : > { %v3519_v37 = vpop.eup %3518 }
 0x308   : > { %v1289_v42 = vmul.f32 %v3519_v37, %v2960_v36 }
 0x30a   : > { %v1290_v50 = vmul.f32 %v1289_v42, %v1211_v43  ;;  %v4379_v49 = vrot.slane %v1289_v42, %v4111_v53 }
 0x30c   : > { %v1292_v61 = vrot.slane %v1290_v50, 7  ;;  %v1299_v62 = vmul.f32 %v4379_v49, %v4228_v14  ;;  %v1300_v45 = vmul.f32 %v4379_v49, %v4233_v17  ;;  %v1301_v0 = vmul.f32 %v4225_v59, %v4379_v49 }
 0x30d   : > { %v1302_v8 = vmul.f32 %v4230_v51, %v4379_v49  ;;  %v1303_v4 = vmul.f32 %v4379_v49, %v4246_v40  ;;  %v1304_v5 = vmul.f32 %v4379_v49, %v4256_v41  ;;  %v1329_v35 = vmul.f32 %v3242_v19, %v4379_v49 }
 0x30e   : > { %v1294_v47 = vsub.f32 %v2960_v36, %v1292_v61  ;;  %v1330_v59 = vmul.f32 %v3243_v24, %v4379_v49  ;;  %v1305_v16 = vmul.f32 %v4241_v15, %v4379_v49  ;;  %v1306_v19 = vmul.f32 %v4251_v28, %v4379_v49 }
 0x30f   : > { %v1307_v24 = vmul.f32 %v4379_v49, %v4266_v39  ;;  %v1308_v20 = vmul.f32 %v4379_v49, %v4276_v56 }
 0x310   : > { %v4382_v3 = vrot.slane %v1294_v47, %v4113_v57 }
 0x312   : > { %v1335_v10 = vadd.f32 %v4382_v3, %v1299_v62  ;;  %v1336_v32 = vadd.f32 %v4382_v3, %v1300_v45  ;;  %v1337_v14 = vadd.f32 %v4382_v3, %v1301_v0  ;;  %v1338_v17 = vadd.f32 %v4382_v3, %v1302_v8 }
 0x313   : > { %v1339_v51 = vadd.f32 %v4382_v3, %v1303_v4  ;;  %v1340_v46 = vadd.f32 %v4382_v3, %v1304_v5  ;;  %v1365_v40 = vadd.f32 %v4382_v3, %v1329_v35  ;;  %v1366_v41 = vadd.f32 %v4382_v3, %v1330_v59 }
 0x314   : > { %v1367_v55 = vmax.f32 %v1335_v10, 0.0  ;;  %v1368_v58 = vmax.f32 %v1336_v32, 0.0  ;;  %v1369_v30 = vmax.f32 %v1337_v14, 0.0  ;;  %v1370_v12 = vmax.f32 %v1338_v17, 0.0 }
 0x315   : > { %v1371_v11 = vmax.f32 %v1339_v51, 0.0  ;;  %v1372_v43 = vmax.f32 %v1340_v46, 0.0  ;;  %v1397_v22 = vmax.f32 %v1365_v40, 0.0  ;;  %v1398_v25 = vmax.f32 %v1366_v41, 0.0 }
 0x316   : > { %v1463_v26 = vpack.c.bf16 %v1368_v58, %v1367_v55  ;;  %v1341_v38 = vadd.f32 %v4382_v3, %v1305_v16  ;;  %v1342_v36 = vadd.f32 %v4382_v3, %v1306_v19  ;;  %v1464_v37 = vpack.c.bf16 %v1370_v12, %v1369_v30 }
 0x317   : > { %v1343_v42 = vadd.f32 %v4382_v3, %v1307_v24  ;;  %v1344_v15 = vadd.f32 %v4382_v3, %v1308_v20  ;;  %v1465_v28 = vpack.c.bf16 %v1372_v43, %v1371_v11  ;;  %v4418_v39 = vpack.c.bf16 %v1398_v25, %v1397_v22 }
 0x318   : > { %3260 = vmatprep.mubr.bf16.mxu0 %v1463_v26  ;;  %v1373_v50 = vmax.f32 %v1341_v38, 0.0  ;;  %v1374_v56 = vmax.f32 %v1342_v36, 0.0  ;;  %v1309_v62 = vmul.f32 %v4261_v44, %v4379_v49  ;;  %v1310_v45 = vmul.f32 %v4271_v52, %v4379_v49 }
 0x319   : > { %3261 = vmatmul.mubr.bf16.vlgmr.msra.gmra.mxu0 %v1464_v37  ;;  %v1375_v61 = vmax.f32 %v1343_v42, 0.0  ;;  %v1376_v47 = vmax.f32 %v1344_v15, 0.0  ;;  %v1311_v0 = vmul.f32 %v4379_v49, %v4286_v9  ;;  %v1312_v8 = vmul.f32 %v4379_v49, %v4296_v29 }
 0x31a   : > { %3264 = vmatprep.mubr.bf16.mxu0 %v1465_v28  ;;  %v1345_v4 = vadd.f32 %v4382_v3, %v1309_v62  ;;  %v1346_v5 = vadd.f32 %v4382_v3, %v1310_v45  ;;  %v1466_v10 = vpack.c.bf16 %v1374_v56, %v1373_v50  ;;  %v1313_v9 = vmul.f32 %v4281_v18, %v4379_v49 }
 0x31b   : > { %v1347_v32 = vadd.f32 %v4382_v3, %v1311_v0  ;;  %v1348_v14 = vadd.f32 %v4382_v3, %v1312_v8  ;;  %v1467_v17 = vpack.c.bf16 %v1376_v47, %v1375_v61  ;;  %v1314_v29 = vmul.f32 %v4291_v2, %v4379_v49 }
 0x31c   : > { %v1377_v44 = vmax.f32 %v1345_v4, 0.0  ;;  %v1378_v52 = vmax.f32 %v1346_v5, 0.0  ;;  %v1315_v51 = vmul.f32 %v4379_v49, %v4306_v33  ;;  %v1316_v46 = vmul.f32 %v4379_v49, %v4316_v27 }
 0x31d   : > { %v1379_v35 = vmax.f32 %v1347_v32, 0.0  ;;  %v1380_v59 = vmax.f32 %v1348_v14, 0.0  ;;  %v1349_v40 = vadd.f32 %v4382_v3, %v1313_v9  ;;  %v1350_v41 = vadd.f32 %v4382_v3, %v1314_v29  ;;  %v3511_v9 = vld [vmem:[%s3925_s24 + $0xe0] sm:$0xff]   ;;  %v3512_v29 = vld [vmem:[%s3925_s24 + $0xd8] sm:$0xff]  }
 0x31e   : > { %v1468_v55 = vpack.c.bf16 %v1378_v52, %v1377_v44  ;;  %v1351_v58 = vadd.f32 %v4382_v3, %v1315_v51  ;;  %v1352_v30 = vadd.f32 %v4382_v3, %v1316_v46  ;;  %v1317_v33 = vmul.f32 %v4301_v60, %v4379_v49  ;;  %v3513_v51 = vld [vmem:[%s3925_s24 + $0xd0] sm:$0xff]   ;;  %v3514_v46 = vld [vmem:[%s3925_s24 + $0xc8] sm:$0xff]  }
 0x31f   : > { %v1469_v12 = vpack.c.bf16 %v1380_v59, %v1379_v35  ;;  %v1381_v18 = vmax.f32 %v1349_v40, 0.0  ;;  %v1382_v2 = vmax.f32 %v1350_v41, 0.0  ;;  %v1318_v27 = vmul.f32 %v4311_v21, %v4379_v49  ;;  %v3508_v35 = vld [vmem:[%s3925_s24 + $0xf8] sm:$0xff]   ;;  %v3510_v59 = vld [vmem:[%s3925_s24 + $0xe8] sm:$0xff]  }
 0x320   : > { %v1383_v11 = vmax.f32 %v1351_v58, 0.0  ;;  %v1384_v43 = vmax.f32 %v1352_v30, 0.0  ;;  %v1319_v16 = vmul.f32 %v4379_v49, %v4326_v34  ;;  %v1320_v19 = vmul.f32 %v4379_v49, %v4336_v54  ;;  %3292 = vmatprep.subr.bf16.mxu1 %v3508_v35 }
 0x321   : > { %3265 = vmatmul.mubr.bf16.gmra.mxu0 %v1466_v10  ;;  %v1353_v24 = vadd.f32 %v4382_v3, %v1317_v33  ;;  %v1354_v20 = vadd.f32 %v4382_v3, %v1318_v27  ;;  %v1470_v22 = vpack.c.bf16 %v1382_v2, %v1381_v18  ;;  %v1321_v34 = vmul.f32 %v4321_v31, %v4379_v49 }
 0x322   : > { %3268 = vmatprep.mubr.bf16.mxu0 %v1467_v17  ;;  %v1355_v25 = vadd.f32 %v4382_v3, %v1319_v16  ;;  %v1356_v26 = vadd.f32 %v4382_v3, %v1320_v19  ;;  %v1471_v38 = vpack.c.bf16 %v1384_v43, %v1383_v11  ;;  %v1322_v54 = vmul.f32 %v4331_v48, %v4379_v49 }
 0x323   : > { %v1385_v60 = vmax.f32 %v1353_v24, 0.0  ;;  %v1386_v21 = vmax.f32 %v1354_v20, 0.0  ;;  %v1323_v42 = vmul.f32 %v4379_v49, %v4346_v6  ;;  %v1324_v15 = vmul.f32 %v4379_v49, %v4356_v63  ;;  %3293 = vmatpush3.bf16.msra.mxu1 %v3508_v35 }
 0x324   : > { %v1387_v36 = vmax.f32 %v1355_v25, 0.0  ;;  %v1388_v37 = vmax.f32 %v1356_v26, 0.0  ;;  %v1357_v28 = vadd.f32 %v4382_v3, %v1321_v34  ;;  %v1358_v50 = vadd.f32 %v4382_v3, %v1322_v54 }
 0x325   : > { %v1472_v56 = vpack.c.bf16 %v1386_v21, %v1385_v60  ;;  %v1359_v61 = vadd.f32 %v4382_v3, %v1323_v42  ;;  %v1360_v47 = vadd.f32 %v4382_v3, %v1324_v15  ;;  %v1325_v6 = vmul.f32 %v4341_v1, %v4379_v49 }
 0x326   : > { %v1473_v62 = vpack.c.bf16 %v1388_v37, %v1387_v36  ;;  %v1389_v31 = vmax.f32 %v1357_v28, 0.0  ;;  %v1390_v48 = vmax.f32 %v1358_v50, 0.0  ;;  %v1326_v63 = vmul.f32 %v4351_v13, %v4379_v49 }
 0x327   : > { %v1391_v45 = vmax.f32 %v1359_v61, 0.0  ;;  %v1392_v0 = vmax.f32 %v1360_v47, 0.0  ;;  %v1328_v8 = vmul.f32 %v4379_v49, %v4372_v23  ;;  %v1327_v4 = vmul.f32 %v4379_v49, %v4364_v7 }
 0x328   : > { %v1361_v5 = vadd.f32 %v4382_v3, %v1325_v6  ;;  %v1362_v10 = vadd.f32 %v4382_v3, %v1326_v63  ;;  %v1474_v32 = vpack.c.bf16 %v1390_v48, %v1389_v31 }
 0x329   : > { %3269 = vmatmul.mubr.bf16.gmra.mxu0 %v1468_v55  ;;  %v1364_v14 = vadd.f32 %v4382_v3, %v1328_v8  ;;  %v1363_v17 = vadd.f32 %v4382_v3, %v1327_v4  ;;  %v1475_v1 = vpack.c.bf16 %v1392_v0, %v1391_v45  ;;  %v3509_v3 = vld [vmem:[%s3925_s24 + $0xf0] sm:$0xff]   ;;  %v3515_v55 = vld [vmem:[%s3925_s24 + $0xc0] sm:$0xff]  }
 0x32a   : > { %3272 = vmatprep.mubr.bf16.mxu0 %v1469_v12  ;;  %v1393_v13 = vmax.f32 %v1361_v5, 0.0  ;;  %v1394_v23 = vmax.f32 %v1362_v10, 0.0  ;;  %3294 = vmatprep.subr.bf16.mxu1 %v3509_v3 }
 0x32b   : > { %v1396_v44 = vmax.f32 %v1364_v14, 0.0  ;;  %v1395_v7 = vmax.f32 %v1363_v17, 0.0  ;;  %3295 = vmatpush3.bf16.msra.mxu1 %v3509_v3 }
 0x32c   : > { %v1476_v49 = vpack.c.bf16 %v1394_v23, %v1393_v13  ;;  %3296 = vmatprep.subr.bf16.mxu1 %v3510_v59 }
 0x32d   : > { %v1477_v52 = vpack.c.bf16 %v1396_v44, %v1395_v7 }
 0x32f   : > { %3297 = vmatpush3.bf16.msra.mxu1 %v3510_v59 }
 0x330   : > { %3298 = vmatprep.subr.bf16.mxu1 %v3511_v9 }
 0x331   : > { %3273 = vmatmul.mubr.bf16.gmra.mxu0 %v1470_v22 }
 0x332   : > { %3276 = vmatprep.mubr.bf16.mxu0 %v1471_v38 }
 0x333   : > { %3299 = vmatpush3.bf16.msra.mxu1 %v3511_v9 }
 0x334   : > { %3300 = vmatprep.subr.bf16.mxu1 %v3512_v29 }
 0x337   : > { %3301 = vmatpush3.bf16.msra.mxu1 %v3512_v29 }
 0x338   : > { %3302 = vmatprep.subr.bf16.mxu1 %v3513_v51 }
 0x339   : > { %3277 = vmatmul.mubr.bf16.gmra.mxu0 %v1472_v56 }
 0x33a   : > { %3280 = vmatprep.mubr.bf16.mxu0 %v1473_v62 }
 0x33b   : > { %3303 = vmatpush3.bf16.msra.mxu1 %v3513_v51 }
 0x33c   : > { %3304 = vmatprep.subr.bf16.mxu1 %v3514_v46 }
 0x33f   : > { %3305 = vmatpush3.bf16.msra.mxu1 %v3514_v46 }
 0x340   : > { %3306 = vmatprep.subr.bf16.mxu1 %v3515_v55 }
 0x341   : > { %3281 = vmatmul.mubr.bf16.gmra.mxu0 %v1474_v32 }
 0x342   : > { %3284 = vmatprep.mubr.bf16.mxu0 %v1475_v1 }
 0x343   : > { %3307 = vmatpush3.bf16.msra.mxu1 %v3515_v55 }
 0x349   : > { %3285 = vmatmul.mubr.bf16.gmra.mxu0 %v1476_v49 }
 0x34a   : > { %3288 = vmatprep.mubr.bf16.mxu0 %v1477_v52 }
 0x351   : > { %3289 = vmatmul.mubr.bf16.gmra.mxu0 %v4418_v39 }
 0x3d9   : > { %v4487_v39 = vpop.f32.mrf.mxu0 }
 0x3da   : > { %v1745_v11 = vmul.f32 %v4487_v39, %v4487_v39 }
 0x3db   : > { %v4490_v40 = vpop.f32.mrf.mxu0 }
 0x3dc   : > { %v1743_v30 = vmul.f32 %v4490_v40, %v4490_v40 }
 0x3dd   : > { %v4492_v41 = vpop.f32.mrf.mxu0 }
 0x3de   : > { %v1746_v16 = vmul.f32 %v4492_v41, %v4492_v41 }
 0x3df   : > { %v4495_v58 = vpop.f32.mrf.mxu0 }
 0x3e0   : > { %v1705_v12 = vadd.f32 %v4495_v58, %v4490_v40  ;;  %v1744_v18 = vmul.f32 %v4495_v58, %v4495_v58 }
 0x3e1   : > { %v4503_v2 = vpop.f32.mrf.mxu0 }
 0x3e2   : > { %v1706_v43 = vadd.f32 %v4487_v39, %v1705_v12  ;;  %v1775_v33 = vadd.f32 %v1744_v18, %v1743_v30  ;;  %v1749_v34 = vmul.f32 %v4503_v2, %v4503_v2 }
 0x3e3   : > { %v4508_v27 = vpop.f32.mrf.mxu0 }
 0x3e4   : > { %v1776_v19 = vadd.f32 %v1775_v33, %v1745_v11  ;;  %v1707_v24 = vadd.f32 %v4492_v41, %v1706_v43  ;;  %v1747_v25 = vmul.f32 %v4508_v27, %v4508_v27 }
 0x3e5   : > { %v4513_v20 = vpop.f32.mrf.mxu0 }
 0x3e6   : > { %v1708_v22 = vadd.f32 %v1707_v24, %v4508_v27  ;;  %v1777_v26 = vadd.f32 %v1776_v19, %v1746_v16  ;;  %v1750_v28 = vmul.f32 %v4513_v20, %v4513_v20 }
 0x3e7   : > { %v4518_v38 = vpop.f32.mrf.mxu0 }
 0x3e8   : > { %v1778_v60 = vadd.f32 %v1777_v26, %v1747_v25  ;;  %v1709_v21 = vadd.f32 %v1708_v22, %v4518_v38  ;;  %v1748_v36 = vmul.f32 %v4518_v38, %v4518_v38 }
 0x3e9   : > { %v4523_v37 = vpop.f32.mrf.mxu0 }
 0x3ea   : > { %v1710_v54 = vadd.f32 %v4503_v2, %v1709_v21  ;;  %v1779_v42 = vadd.f32 %v1778_v60, %v1748_v36  ;;  %v1753_v8 = vmul.f32 %v4523_v37, %v4523_v37 }
 0x3eb   : > { %v4528_v15 = vpop.f32.mrf.mxu0 }
 0x3ec   : > { %v1780_v50 = vadd.f32 %v1779_v42, %v1749_v34  ;;  %v1711_v56 = vadd.f32 %v4513_v20, %v1710_v54  ;;  %v1751_v62 = vmul.f32 %v4528_v15, %v4528_v15 }
 0x3ed   : > { %v4533_v61 = vpop.f32.mrf.mxu0 }
 0x3ee   : > { %v1712_v47 = vadd.f32 %v1711_v56, %v4528_v15  ;;  %v1781_v31 = vadd.f32 %v1780_v50, %v1750_v28  ;;  %v1754_v32 = vmul.f32 %v4533_v61, %v4533_v61 }
 0x3ef   : > { %v4538_v48 = vpop.f32.mrf.mxu0 }
 0x3f0   : > { %v1782_v45 = vadd.f32 %v1781_v31, %v1751_v62  ;;  %v1713_v0 = vadd.f32 %v1712_v47, %v4538_v48  ;;  %v1752_v6 = vmul.f32 %v4538_v48, %v4538_v48 }
 0x3f1   : > { %v4543_v63 = vpop.f32.mrf.mxu0 }
 0x3f2   : > { %v1714_v4 = vadd.f32 %v4523_v37, %v1713_v0  ;;  %v1783_v5 = vadd.f32 %v1782_v45, %v1752_v6  ;;  %v1757_v59 = vmul.f32 %v4543_v63, %v4543_v63 }
 0x3f3   : > { %v4548_v10 = vpop.f32.mrf.mxu0 }
 0x3f4   : > { %v1784_v14 = vadd.f32 %v1783_v5, %v1753_v8  ;;  %v1715_v17 = vadd.f32 %v4533_v61, %v1714_v4  ;;  %v1755_v23 = vmul.f32 %v4548_v10, %v4548_v10 }
 0x3f5   : > { %v4553_v1 = vpop.f32.mrf.mxu0 }
 0x3f6   : > { %v1716_v13 = vadd.f32 %v1715_v17, %v4548_v10  ;;  %v1785_v44 = vadd.f32 %v1784_v14, %v1754_v32  ;;  %v1758_v46 = vmul.f32 %v4553_v1, %v4553_v1 }
 0x3f7   : > { %v4558_v7 = vpop.f32.mrf.mxu0 }
 0x3f8   : > { %v1786_v49 = vadd.f32 %v1785_v44, %v1755_v23  ;;  %v1717_v52 = vadd.f32 %v1716_v13, %v4558_v7  ;;  %v1756_v35 = vmul.f32 %v4558_v7, %v4558_v7 }
 0x3f9   : > { %v4563_v3 = vpop.f32.mrf.mxu0 }
 0x3fa   : > { %v1718_v9 = vadd.f32 %v4543_v63, %v1717_v52  ;;  %v1787_v29 = vadd.f32 %v1786_v49, %v1756_v35  ;;  %v1761_v25 = vmul.f32 %v4563_v3, %v4563_v3 }
 0x3fb   : > { %v4568_v51 = vpop.f32.mrf.mxu0 }
 0x3fc   : > { %v1788_v55 = vadd.f32 %v1787_v29, %v1757_v59  ;;  %v1719_v30 = vadd.f32 %v4553_v1, %v1718_v9  ;;  %v1759_v11 = vmul.f32 %v4568_v51, %v4568_v51 }
 0x3fd   : > { %v4573_v12 = vpop.f32.mrf.mxu0 }
 0x3fe   : > { %v1720_v18 = vadd.f32 %v1719_v30, %v4568_v51  ;;  %v1789_v43 = vadd.f32 %v1788_v55, %v1758_v46  ;;  %v1762_v36 = vmul.f32 %v4573_v12, %v4573_v12 }
 0x3ff   : > { %v4578_v33 = vpop.f32.mrf.mxu0 }
 0x400   : > { %v1790_v16 = vadd.f32 %v1789_v43, %v1759_v11  ;;  %v1721_v19 = vadd.f32 %v1720_v18, %v4578_v33  ;;  %v1760_v24 = vmul.f32 %v4578_v33, %v4578_v33 }
 0x401   : > { %v4583_v22 = vpop.f32.mrf.mxu0 }
 0x402   : > { %v1722_v26 = vadd.f32 %v4563_v3, %v1721_v19  ;;  %v1791_v60 = vadd.f32 %v1790_v16, %v1760_v24  ;;  %v1765_v6 = vmul.f32 %v4583_v22, %v4583_v22 }
 0x403   : > { %v4588_v21 = vpop.f32.mrf.mxu0 }
 0x404   : > { %v1792_v34 = vadd.f32 %v1791_v60, %v1761_v25  ;;  %v1723_v54 = vadd.f32 %v4573_v12, %v1722_v26  ;;  %v1763_v50 = vmul.f32 %v4588_v21, %v4588_v21 }
 0x405   : > { %v4593_v42 = vpop.f32.mrf.mxu0 }
 0x406   : > { %v1724_v28 = vadd.f32 %v1723_v54, %v4588_v21  ;;  %v1793_v56 = vadd.f32 %v1792_v34, %v1762_v36  ;;  %v1766_v32 = vmul.f32 %v4593_v42, %v4593_v42 }
 0x407   : > { %v4598_v47 = vpop.f32.mrf.mxu0 }
 0x408   : > { %v1794_v62 = vadd.f32 %v1793_v56, %v1763_v50  ;;  %v1725_v31 = vadd.f32 %v1724_v28, %v4598_v47  ;;  %v1764_v45 = vmul.f32 %v4598_v47, %v4598_v47 }
 0x409   : > { %v4603_v0 = vpop.f32.mrf.mxu0 }
 0x40a   : > { %v1726_v8 = vadd.f32 %v4583_v22, %v1725_v31  ;;  %v1795_v4 = vadd.f32 %v1794_v62, %v1764_v45  ;;  %v1769_v46 = vmul.f32 %v4603_v0, %v4603_v0 }
 0x40b   : > { %v4608_v5 = vpop.f32.mrf.mxu0 }
 0x40c   : > { %v1796_v14 = vadd.f32 %v1795_v4, %v1765_v6  ;;  %v1727_v17 = vadd.f32 %v4593_v42, %v1726_v8  ;;  %v1767_v44 = vmul.f32 %v4608_v5, %v4608_v5 }
 0x40d   : > { %v4613_v13 = vpop.f32.mrf.mxu0 }
 0x40e   : > { %v1728_v23 = vadd.f32 %v1727_v17, %v4608_v5  ;;  %v1797_v49 = vadd.f32 %v1796_v14, %v1766_v32  ;;  %v1770_v11 = vmul.f32 %v4613_v13, %v4613_v13 }
 0x40f   : > { %v4618_v52 = vpop.f32.mrf.mxu0 }
 0x410   : > { %v1798_v35 = vadd.f32 %v1797_v49, %v1767_v44  ;;  %v1729_v59 = vadd.f32 %v1728_v23, %v4618_v52  ;;  %v1768_v9 = vmul.f32 %v4618_v52, %v4618_v52 }
 0x411   : > { %v3290_v29 = vpop.f32.mrf.mxu0 }
 0x412   : > { %v1730_v55 = vadd.f32 %v4603_v0, %v1729_v59  ;;  %v1799_v30 = vadd.f32 %v1798_v35, %v1768_v9  ;;  %v1773_v28 = vmul.f32 %v3290_v29, %v3290_v29 }
 0x413   : > { %v1690_v18 = vpop.f32.mrf.mxu0 }
 0x414   : > { %v1800_v43 = vadd.f32 %v1799_v30, %v1769_v46  ;;  %v1731_v16 = vadd.f32 %v4613_v13, %v1730_v55  ;;  %v1771_v25 = vmul.f32 %v1690_v18, %v1690_v18 }
 0x415   : > { %v3291_v19 = vpop.f32.mrf.mxu0 }
 0x416   : > { %v1732_v24 = vadd.f32 %v1731_v16, %v1690_v18  ;;  %v1801_v26 = vadd.f32 %v1800_v43, %v1770_v11  ;;  %v1774_v62 = vmul.f32 %v3291_v19, %v3291_v19 }
 0x417   : > { %v1693_v60 = vpop.f32.mrf.mxu0 }
 0x418   : > { %v1802_v36 = vadd.f32 %v1801_v26, %v1771_v25  ;;  %v1733_v34 = vadd.f32 %v1732_v24, %v1693_v60  ;;  %v1772_v54 = vmul.f32 %v1693_v60, %v1693_v60  ;;  %v2985_v25 = vld [vmem:[%s3931_s12 + $0x4] sm:$0x3] }
 0x41a   : > { %v1734_v50 = vadd.f32 %v3290_v29, %v1733_v34  ;;  %v1803_v56 = vadd.f32 %v1802_v36, %v1772_v54 }
 0x41c   : > { %v1735_v31 = vadd.f32 %v3291_v19, %v1734_v50  ;;  %v1804_v45 = vadd.f32 %v1803_v56, %v1773_v28 }
 0x41e   : > { %v1736_v6 = vrot.slane %v1735_v31, 4  ;;  %v1805_v8 = vadd.f32 %v1804_v45, %v1774_v62 }
 0x420   : > { %v1737_v4 = vadd.f32 %v1736_v6, %v1735_v31  ;;  %v1806_v32 = vrot.slane %v1805_v8, 4 }
 0x422   : > { %v1738_v14 = vrot.slane %v1737_v4, 2  ;;  %v1807_v17 = vadd.f32 %v1806_v32, %v1805_v8 }
 0x424   : > { %v1739_v23 = vadd.f32 %v1738_v14, %v1737_v4  ;;  %v1808_v44 = vrot.slane %v1807_v17, 2 }
 0x426   : > { %v1740_v49 = vrot.slane %v1739_v23, 1  ;;  %v1809_v35 = vadd.f32 %v1808_v44, %v1807_v17 }
 0x428   : > { %v1741_v59 = vadd.f32 %v1740_v49, %v1739_v23  ;;  %v1810_v9 = vrot.slane %v1809_v35, 1 }
 0x42a   : > { %v1742_v46 = vmul.f32 0.00390625, %v1741_v59  ;;  %v1811_v55 = vadd.f32 %v1810_v9, %v1809_v35 }
 0x42c   : > { %v1812_v30 = vmul.f32 0.00390625, %v1811_v55  ;;  %v1813_v11 = vmul.f32 %v1742_v46, %v1742_v46 }
 0x42e   : > { %v1814_v43 = vsub.f32 %v1812_v30, %v1813_v11 }
 0x430   : > { %v1815_v16 = vmax.f32 %v1814_v43, 0.0 }
 0x432   : > { %v1818_v24 = vadd.f32 1e-05, %v1815_v16 }
 0x434   : > { %3520 = vrsqrt.f32 %v1818_v24 }
 0x441   : > { %v3521_v26 = vpop.eup %3520 }
 0x442   : > { %v1820_v36 = vmul.f32 %v3521_v26, %v2985_v25 }
 0x444   : > { %v1821_v34 = vmul.f32 %v1820_v36, %v1742_v46  ;;  %v4631_v50 = vrot.slane %v1820_v36, %v4111_v53 }
 0x446   : > { %v1823_v54 = vrot.slane %v1821_v34, 7  ;;  %v1830_v62 = vmul.f32 %v4631_v50, %v4490_v40  ;;  %v1831_v31 = vmul.f32 %v4631_v50, %v4495_v58  ;;  %v1832_v45 = vmul.f32 %v4487_v39, %v4631_v50 }
 0x447   : > { %v1833_v6 = vmul.f32 %v4492_v41, %v4631_v50  ;;  %v1834_v8 = vmul.f32 %v4631_v50, %v4508_v27  ;;  %v1835_v4 = vmul.f32 %v4631_v50, %v4518_v38  ;;  %v1859_v40 = vmul.f32 %v4631_v50, %v1693_v60 }
 0x448   : > { %v1825_v28 = vsub.f32 %v2985_v25, %v1823_v54  ;;  %v1858_v58 = vmul.f32 %v4631_v50, %v1690_v18  ;;  %v1860_v41 = vmul.f32 %v3290_v29, %v4631_v50  ;;  %v1861_v23 = vmul.f32 %v3291_v19, %v4631_v50 }
 0x449   : > { %v1836_v29 = vmul.f32 %v4503_v2, %v4631_v50  ;;  %v1837_v11 = vmul.f32 %v4513_v20, %v4631_v50  ;;  %v1838_v43 = vmul.f32 %v4631_v50, %v4528_v15  ;;  %v1839_v16 = vmul.f32 %v4631_v50, %v4538_v48 }
 0x44a   : > { %v4634_v56 = vrot.slane %v1825_v28, %v4113_v57 }
 0x44c   : > { %v1866_v32 = vadd.f32 %v4634_v56, %v1830_v62  ;;  %v1867_v14 = vadd.f32 %v4634_v56, %v1831_v31  ;;  %v1868_v17 = vadd.f32 %v4634_v56, %v1832_v45  ;;  %v1869_v39 = vadd.f32 %v4634_v56, %v1833_v6 }
 0x44d   : > { %v1870_v27 = vadd.f32 %v4634_v56, %v1834_v8  ;;  %v1871_v38 = vadd.f32 %v4634_v56, %v1835_v4  ;;  %v1895_v44 = vadd.f32 %v4634_v56, %v1859_v40  ;;  %v1894_v49 = vadd.f32 %v4634_v56, %v1858_v58 }
 0x44e   : > { %v1896_v60 = vadd.f32 %v4634_v56, %v1860_v41  ;;  %v1897_v18 = vadd.f32 %v4634_v56, %v1861_v23  ;;  %v1898_v35 = vmax.f32 %v1866_v32, 0.0  ;;  %v1899_v59 = vmax.f32 %v1867_v14, 0.0 }
 0x44f   : > { %v1900_v9 = vmax.f32 %v1868_v17, 0.0  ;;  %v1901_v46 = vmax.f32 %v1869_v39, 0.0  ;;  %v1902_v19 = vmax.f32 %v1870_v27, 0.0  ;;  %v1903_v55 = vmax.f32 %v1871_v38, 0.0 }
 0x450   : > { %v1927_v30 = vmax.f32 %v1895_v44, 0.0  ;;  %v1926_v24 = vmax.f32 %v1894_v49, 0.0  ;;  %v1928_v25 = vmax.f32 %v1896_v60, 0.0  ;;  %v1929_v26 = vmax.f32 %v1897_v18, 0.0 }
 0x451   : > { %v1994_v36 = vpack.c.bf16 %v1899_v59, %v1898_v35  ;;  %v1872_v34 = vadd.f32 %v4634_v56, %v1836_v29  ;;  %v1873_v2 = vadd.f32 %v4634_v56, %v1837_v11  ;;  %v1995_v54 = vpack.c.bf16 %v1901_v46, %v1900_v9 }
 0x452   : > { %v1874_v28 = vadd.f32 %v4634_v56, %v1838_v43  ;;  %v1875_v62 = vadd.f32 %v4634_v56, %v1839_v16  ;;  %v1996_v20 = vpack.c.bf16 %v1903_v55, %v1902_v19  ;;  %v4674_v15 = vpack.c.bf16 %v1927_v30, %v1926_v24 }
 0x453   : > { %3308 = vmatprep.mubr.bf16.mxu1 %v1994_v36  ;;  %v4676_v48 = vpack.c.bf16 %v1929_v26, %v1928_v25  ;;  %v1904_v31 = vmax.f32 %v1872_v34, 0.0  ;;  %v1905_v45 = vmax.f32 %v1873_v2, 0.0  ;;  %v1840_v4 = vmul.f32 %v4523_v37, %v4631_v50 }
 0x454   : > { %3309 = vmatmul.mubr.bf16.vlgmr.msra.gmra.mxu1 %v1995_v54  ;;  %v1906_v6 = vmax.f32 %v1874_v28, 0.0  ;;  %v1907_v8 = vmax.f32 %v1875_v62, 0.0  ;;  %v1841_v32 = vmul.f32 %v4533_v61, %v4631_v50  ;;  %v1842_v14 = vmul.f32 %v4631_v50, %v4548_v10 }
 0x455   : > { %3312 = vmatprep.mubr.bf16.mxu1 %v1996_v20  ;;  %v1843_v40 = vmul.f32 %v4631_v50, %v4558_v7  ;;  %v1876_v58 = vadd.f32 %v4634_v56, %v1840_v4  ;;  %v1997_v39 = vpack.c.bf16 %v1905_v45, %v1904_v31  ;;  %v1844_v10 = vmul.f32 %v4543_v63, %v4631_v50 }
 0x456   : > { %v1877_v17 = vadd.f32 %v4634_v56, %v1841_v32  ;;  %v1878_v41 = vadd.f32 %v4634_v56, %v1842_v14  ;;  %v1998_v27 = vpack.c.bf16 %v1907_v8, %v1906_v6  ;;  %v1845_v7 = vmul.f32 %v4553_v1, %v4631_v50 }
 0x457   : > { %v1879_v23 = vadd.f32 %v4634_v56, %v1843_v40  ;;  %v1908_v37 = vmax.f32 %v1876_v58, 0.0  ;;  %v1846_v49 = vmul.f32 %v4631_v50, %v4568_v51  ;;  %v1847_v60 = vmul.f32 %v4631_v50, %v4578_v33 }
 0x458   : > { %v1909_v61 = vmax.f32 %v1877_v17, 0.0  ;;  %v1910_v38 = vmax.f32 %v1878_v41, 0.0  ;;  %v1880_v18 = vadd.f32 %v4634_v56, %v1844_v10  ;;  %v1881_v35 = vadd.f32 %v4634_v56, %v1845_v7 }
 0x459   : > { %v1911_v44 = vmax.f32 %v1879_v23, 0.0  ;;  %v1882_v9 = vadd.f32 %v4634_v56, %v1846_v49  ;;  %v1883_v46 = vadd.f32 %v4634_v56, %v1847_v60  ;;  %v1848_v51 = vmul.f32 %v4563_v3, %v4631_v50 }
 0x45a   : > { %v1999_v59 = vpack.c.bf16 %v1909_v61, %v1908_v37  ;;  %v1912_v63 = vmax.f32 %v1880_v18, 0.0  ;;  %v1913_v1 = vmax.f32 %v1881_v35, 0.0  ;;  %v1849_v33 = vmul.f32 %v4573_v12, %v4631_v50 }
 0x45b   : > { %v2000_v29 = vpack.c.bf16 %v1911_v44, %v1910_v38  ;;  %v1914_v19 = vmax.f32 %v1882_v9, 0.0  ;;  %v1915_v55 = vmax.f32 %v1883_v46, 0.0  ;;  %v1850_v30 = vmul.f32 %v4631_v50, %v4588_v21 }
 0x45c   : > { %3313 = vmatmul.mubr.bf16.gmra.mxu1 %v1997_v39  ;;  %v1851_v11 = vmul.f32 %v4631_v50, %v4598_v47  ;;  %v1884_v43 = vadd.f32 %v4634_v56, %v1848_v51  ;;  %v1885_v16 = vadd.f32 %v4634_v56, %v1849_v33  ;;  %v2001_v24 = vpack.c.bf16 %v1913_v1, %v1912_v63 }
 0x45d   : > { %3316 = vmatprep.mubr.bf16.mxu1 %v1998_v27  ;;  %v1886_v25 = vadd.f32 %v4634_v56, %v1850_v30  ;;  %v2002_v36 = vpack.c.bf16 %v1915_v55, %v1914_v19  ;;  %v1852_v21 = vmul.f32 %v4583_v22, %v4631_v50  ;;  %v1853_v47 = vmul.f32 %v4593_v42, %v4631_v50 }
 0x45e   : > { %v1887_v26 = vadd.f32 %v4634_v56, %v1851_v11  ;;  %v1916_v3 = vmax.f32 %v1884_v43, 0.0  ;;  %v1917_v12 = vmax.f32 %v1885_v16, 0.0  ;;  %v1854_v54 = vmul.f32 %v4631_v50, %v4608_v5 }
 0x45f   : > { %v1918_v34 = vmax.f32 %v1886_v25, 0.0  ;;  %v1855_v28 = vmul.f32 %v4631_v50, %v4618_v52  ;;  %v1888_v62 = vadd.f32 %v4634_v56, %v1852_v21  ;;  %v1889_v20 = vadd.f32 %v4634_v56, %v1853_v47 }
 0x460   : > { %v1919_v2 = vmax.f32 %v1887_v26, 0.0  ;;  %v2003_v31 = vpack.c.bf16 %v1917_v12, %v1916_v3  ;;  %v1890_v45 = vadd.f32 %v4634_v56, %v1854_v54  ;;  %v1856_v5 = vmul.f32 %v4603_v0, %v4631_v50 }
 0x461   : > { %v1891_v6 = vadd.f32 %v4634_v56, %v1855_v28  ;;  %v1920_v22 = vmax.f32 %v1888_v62, 0.0  ;;  %v1921_v42 = vmax.f32 %v1889_v20, 0.0  ;;  %v1857_v52 = vmul.f32 %v4613_v13, %v4631_v50 }
 0x462   : > { %v2004_v8 = vpack.c.bf16 %v1919_v2, %v1918_v34  ;;  %v1922_v4 = vmax.f32 %v1890_v45, 0.0  ;;  %v1892_v14 = vadd.f32 %v4634_v56, %v1856_v5 }
 0x463   : > { %v1923_v32 = vmax.f32 %v1891_v6, 0.0  ;;  %v1893_v40 = vadd.f32 %v4634_v56, %v1857_v52  ;;  %v2005_v58 = vpack.c.bf16 %v1921_v42, %v1920_v22 }
 0x464   : > { %3317 = vmatmul.mubr.bf16.gmra.mxu1 %v1999_v59  ;;  %v1924_v39 = vmax.f32 %v1892_v14, 0.0 }
 0x465   : > { %3320 = vmatprep.mubr.bf16.mxu1 %v2000_v29  ;;  %v2006_v17 = vpack.c.bf16 %v1923_v32, %v1922_v4  ;;  %v1925_v41 = vmax.f32 %v1893_v40, 0.0 }
 0x467   : > { %v2007_v23 = vpack.c.bf16 %v1925_v41, %v1924_v39 }
 0x46c   : > { %3321 = vmatmul.mubr.bf16.gmra.mxu1 %v2001_v24 }
 0x46d   : > { %3324 = vmatprep.mubr.bf16.mxu1 %v2002_v36 }
 0x474   : > { %3325 = vmatmul.mubr.bf16.gmra.mxu1 %v2003_v31 }
 0x475   : > { %3328 = vmatprep.mubr.bf16.mxu1 %v2004_v8 }
 0x47c   : > { %3329 = vmatmul.mubr.bf16.gmra.mxu1 %v2005_v58 }
 0x47d   : > { %3332 = vmatprep.mubr.bf16.mxu1 %v2006_v17 }
 0x484   : > { %3333 = vmatmul.mubr.bf16.gmra.mxu1 %v2007_v23 }
 0x485   : > { %3336 = vmatprep.mubr.bf16.mxu1 %v4674_v15 }
 0x48c   : > { %3337 = vmatmul.mubr.bf16.gmra.mxu1 %v4676_v48 }
 0x514   : > { %v4734_v0 = vpop.f32.mrf.mxu1 }
 0x515   : > { %v2276_v48 = vmul.f32 %v4734_v0, %v4734_v0 }
 0x516   : > { %v4736_v27 = vpop.f32.mrf.mxu1 }
 0x517   : > { %v2274_v56 = vmul.f32 %v4736_v27, %v4736_v27 }
 0x518   : > { %v4738_v13 = vpop.f32.mrf.mxu1 }
 0x519   : > { %v2277_v7 = vmul.f32 %v4738_v13, %v4738_v13 }
 0x51a   : > { %v4740_v50 = vpop.f32.mrf.mxu1 }
 0x51b   : > { %v2236_v37 = vadd.f32 %v4740_v50, %v4736_v27  ;;  %v2275_v61 = vmul.f32 %v4740_v50, %v4740_v50 }
 0x51c   : > { %v4748_v15 = vpop.f32.mrf.mxu1 }
 0x51d   : > { %v2237_v38 = vadd.f32 %v4734_v0, %v2236_v37  ;;  %v2306_v44 = vadd.f32 %v2275_v61, %v2274_v56  ;;  %v2280_v55 = vmul.f32 %v4748_v15, %v4748_v15 }
 0x51e   : > { %v4753_v10 = vpop.f32.mrf.mxu1 }
 0x51f   : > { %v2307_v49 = vadd.f32 %v2306_v44, %v2276_v48  ;;  %v2238_v60 = vadd.f32 %v4738_v13, %v2237_v38  ;;  %v2278_v59 = vmul.f32 %v4753_v10, %v4753_v10 }
 0x520   : > { %v4758_v18 = vpop.f32.mrf.mxu1 }
 0x521   : > { %v2239_v35 = vadd.f32 %v2238_v60, %v4753_v10  ;;  %v2308_v9 = vadd.f32 %v2307_v49, %v2277_v7  ;;  %v2281_v11 = vmul.f32 %v4758_v18, %v4758_v18 }
 0x522   : > { %v4763_v46 = vpop.f32.mrf.mxu1 }
 0x523   : > { %v2309_v29 = vadd.f32 %v2308_v9, %v2278_v59  ;;  %v2240_v63 = vadd.f32 %v2239_v35, %v4763_v46  ;;  %v2279_v1 = vmul.f32 %v4763_v46, %v4763_v46 }
 0x524   : > { %v4768_v19 = vpop.f32.mrf.mxu1 }
 0x525   : > { %v2241_v51 = vadd.f32 %v4748_v15, %v2240_v63  ;;  %v2310_v33 = vadd.f32 %v2309_v29, %v2279_v1  ;;  %v2284_v47 = vmul.f32 %v4768_v19, %v4768_v19 }
 0x526   : > { %v4773_v30 = vpop.f32.mrf.mxu1 }
 0x527   : > { %v2311_v43 = vadd.f32 %v2310_v33, %v2280_v55  ;;  %v2242_v16 = vadd.f32 %v4758_v18, %v2241_v51  ;;  %v2282_v26 = vmul.f32 %v4773_v30, %v4773_v30 }
 0x528   : > { %v4778_v24 = vpop.f32.mrf.mxu1 }
 0x529   : > { %v2243_v25 = vadd.f32 %v2242_v16, %v4773_v30  ;;  %v2312_v36 = vadd.f32 %v2311_v43, %v2281_v11  ;;  %v2285_v20 = vmul.f32 %v4778_v24, %v4778_v24 }
 0x52a   : > { %v4783_v3 = vpop.f32.mrf.mxu1 }
 0x52b   : > { %v2313_v12 = vadd.f32 %v2312_v36, %v2282_v26  ;;  %v2244_v34 = vadd.f32 %v2243_v25, %v4783_v3  ;;  %v2283_v2 = vmul.f32 %v4783_v3, %v4783_v3 }
 0x52c   : > { %v4788_v21 = vpop.f32.mrf.mxu1 }
 0x52d   : > { %v2245_v54 = vadd.f32 %v4768_v19, %v2244_v34  ;;  %v2314_v28 = vadd.f32 %v2313_v12, %v2283_v2  ;;  %v2288_v40 = vmul.f32 %v4788_v21, %v4788_v21 }
 0x52e   : > { %v4793_v62 = vpop.f32.mrf.mxu1 }
 0x52f   : > { %v2315_v31 = vadd.f32 %v2314_v28, %v2284_v47  ;;  %v2246_v45 = vadd.f32 %v4778_v24, %v2245_v54  ;;  %v2286_v22 = vmul.f32 %v4793_v62, %v4793_v62 }
 0x530   : > { %v4798_v6 = vpop.f32.mrf.mxu1 }
 0x531   : > { %v2247_v8 = vadd.f32 %v2246_v45, %v4793_v62  ;;  %v2316_v42 = vadd.f32 %v2315_v31, %v2285_v20  ;;  %v2289_v41 = vmul.f32 %v4798_v6, %v4798_v6 }
 0x532   : > { %v4803_v4 = vpop.f32.mrf.mxu1 }
 0x533   : > { %v2317_v32 = vadd.f32 %v2316_v42, %v2286_v22  ;;  %v2248_v5 = vadd.f32 %v2247_v8, %v4803_v4  ;;  %v2287_v52 = vmul.f32 %v4803_v4, %v4803_v4 }
 0x534   : > { %v4808_v14 = vpop.f32.mrf.mxu1 }
 0x535   : > { %v2249_v58 = vadd.f32 %v4788_v21, %v2248_v5  ;;  %v2318_v17 = vadd.f32 %v2317_v32, %v2287_v52  ;;  %v2292_v59 = vmul.f32 %v4808_v14, %v4808_v14 }
 0x536   : > { %v4813_v39 = vpop.f32.mrf.mxu1 }
 0x537   : > { %v2319_v23 = vadd.f32 %v2318_v17, %v2288_v40  ;;  %v2250_v56 = vadd.f32 %v4798_v6, %v2249_v58  ;;  %v2290_v48 = vmul.f32 %v4813_v39, %v4813_v39 }
 0x538   : > { %v4818_v37 = vpop.f32.mrf.mxu1 }
 0x539   : > { %v2251_v61 = vadd.f32 %v2250_v56, %v4813_v39  ;;  %v2320_v38 = vadd.f32 %v2319_v23, %v2289_v41  ;;  %v2293_v1 = vmul.f32 %v4818_v37, %v4818_v37 }
 0x53a   : > { %v4823_v44 = vpop.f32.mrf.mxu1 }
 0x53b   : > { %v2321_v7 = vadd.f32 %v2320_v38, %v2290_v48  ;;  %v2252_v49 = vadd.f32 %v2251_v61, %v4823_v44  ;;  %v2291_v60 = vmul.f32 %v4823_v44, %v4823_v44 }
 0x53c   : > { %v4828_v35 = vpop.f32.mrf.mxu1 }
 0x53d   : > { %v2253_v9 = vadd.f32 %v4808_v14, %v2252_v49  ;;  %v2322_v29 = vadd.f32 %v2321_v7, %v2291_v60  ;;  %v2296_v2 = vmul.f32 %v4828_v35, %v4828_v35 }
 0x53e   : > { %v4833_v63 = vpop.f32.mrf.mxu1 }
 0x53f   : > { %v2323_v55 = vadd.f32 %v2322_v29, %v2292_v59  ;;  %v2254_v51 = vadd.f32 %v4818_v37, %v2253_v9  ;;  %v2294_v43 = vmul.f32 %v4833_v63, %v4833_v63 }
 0x540   : > { %v4838_v33 = vpop.f32.mrf.mxu1 }
 0x541   : > { %v2255_v11 = vadd.f32 %v2254_v51, %v4833_v63  ;;  %v2324_v16 = vadd.f32 %v2323_v55, %v2293_v1  ;;  %v2297_v20 = vmul.f32 %v4838_v33, %v4838_v33 }
 0x542   : > { %v4843_v25 = vpop.f32.mrf.mxu1 }
 0x543   : > { %v2325_v26 = vadd.f32 %v2324_v16, %v2294_v43  ;;  %v2256_v36 = vadd.f32 %v2255_v11, %v4843_v25  ;;  %v2295_v12 = vmul.f32 %v4843_v25, %v4843_v25 }
 0x544   : > { %v4848_v34 = vpop.f32.mrf.mxu1 }
 0x545   : > { %v2257_v47 = vadd.f32 %v4828_v35, %v2256_v36  ;;  %v2326_v54 = vadd.f32 %v2325_v26, %v2295_v12  ;;  %v2300_v41 = vmul.f32 %v4848_v34, %v4848_v34 }
 0x546   : > { %v4853_v28 = vpop.f32.mrf.mxu1 }
 0x547   : > { %v2327_v31 = vadd.f32 %v2326_v54, %v2296_v2  ;;  %v2258_v45 = vadd.f32 %v4838_v33, %v2257_v47  ;;  %v2298_v42 = vmul.f32 %v4853_v28, %v4853_v28 }
 0x548   : > { %v4858_v8 = vpop.f32.mrf.mxu1 }
 0x549   : > { %v2259_v22 = vadd.f32 %v2258_v45, %v4853_v28  ;;  %v2328_v32 = vadd.f32 %v2327_v31, %v2297_v20  ;;  %v2301_v48 = vmul.f32 %v4858_v8, %v4858_v8 }
 0x54a   : > { %v4863_v5 = vpop.f32.mrf.mxu1 }
 0x54b   : > { %v2329_v52 = vadd.f32 %v2328_v32, %v2298_v42  ;;  %v2260_v40 = vadd.f32 %v2259_v22, %v4863_v5  ;;  %v2299_v58 = vmul.f32 %v4863_v5, %v4863_v5 }
 0x54c   : > { %v4868_v17 = vpop.f32.mrf.mxu1 }
 0x54d   : > { %v2261_v23 = vadd.f32 %v4848_v34, %v2260_v40  ;;  %v2330_v56 = vadd.f32 %v2329_v52, %v2299_v58  ;;  %v2304_v11 = vmul.f32 %v4868_v17, %v4868_v17 }
 0x54e   : > { %v4873_v61 = vpop.f32.mrf.mxu1 }
 0x54f   : > { %v2331_v38 = vadd.f32 %v2330_v56, %v2300_v41  ;;  %v2262_v7 = vadd.f32 %v4858_v8, %v2261_v23  ;;  %v2302_v59 = vmul.f32 %v4873_v61, %v4873_v61 }
 0x550   : > { %v4878_v49 = vpop.f32.mrf.mxu1 }
 0x551   : > { %v2263_v60 = vadd.f32 %v2262_v7, %v4873_v61  ;;  %v2332_v9 = vadd.f32 %v2331_v38, %v2301_v48  ;;  %v2305_v26 = vmul.f32 %v4878_v49, %v4878_v49 }
 0x552   : > { %v4883_v29 = vpop.f32.mrf.mxu1 }
 0x553   : > { %v2333_v1 = vadd.f32 %v2332_v9, %v2302_v59  ;;  %v2264_v55 = vadd.f32 %v2263_v60, %v4883_v29  ;;  %v2303_v51 = vmul.f32 %v4883_v29, %v4883_v29  ;;  %v3010_v59 = vld [vmem:[%s3931_s12 + $0x6] sm:$0x3] }
 0x555   : > { %v2265_v43 = vadd.f32 %v4868_v17, %v2264_v55  ;;  %v2334_v16 = vadd.f32 %v2333_v1, %v2303_v51 }
 0x557   : > { %v2266_v36 = vadd.f32 %v4878_v49, %v2265_v43  ;;  %v2335_v12 = vadd.f32 %v2334_v16, %v2304_v11 }
 0x559   : > { %v2267_v2 = vrot.slane %v2266_v36, 4  ;;  %v2336_v47 = vadd.f32 %v2335_v12, %v2305_v26 }
 0x55b   : > { %v2268_v54 = vadd.f32 %v2267_v2, %v2266_v36  ;;  %v2337_v20 = vrot.slane %v2336_v47, 4 }
 0x55d   : > { %v2269_v31 = vrot.slane %v2268_v54, 2  ;;  %v2338_v45 = vadd.f32 %v2337_v20, %v2336_v47 }
 0x55f   : > { %v2270_v22 = vadd.f32 %v2269_v31, %v2268_v54  ;;  %v2339_v42 = vrot.slane %v2338_v45, 2 }
 0x561   : > { %v2271_v32 = vrot.slane %v2270_v22, 1  ;;  %v2340_v52 = vadd.f32 %v2339_v42, %v2338_v45 }
 0x563   : > { %v2272_v40 = vadd.f32 %v2271_v32, %v2270_v22  ;;  %v2341_v58 = vrot.slane %v2340_v52, 1 }
 0x565   : > { %v2273_v41 = vmul.f32 0.00390625, %v2272_v40  ;;  %v2342_v23 = vadd.f32 %v2341_v58, %v2340_v52 }
 0x567   : > { %v2343_v56 = vmul.f32 0.00390625, %v2342_v23  ;;  %v2344_v48 = vmul.f32 %v2273_v41, %v2273_v41 }
 0x569   : > { %v2345_v38 = vsub.f32 %v2343_v56, %v2344_v48 }
 0x56b   : > { %v2346_v7 = vmax.f32 %v2345_v38, 0.0 }
 0x56d   : > { %v2349_v60 = vadd.f32 1e-05, %v2346_v7 }
 0x56f   : > { %3522 = vrsqrt.f32 %v2349_v60 }
 0x57c   : > { %v3523_v9 = vpop.eup %3522 }
 0x57d   : > { %v2351_v1 = vmul.f32 %v3523_v9, %v3010_v59 }
 0x57f   : > { %v2352_v55 = vmul.f32 %v2351_v1, %v2273_v41  ;;  %v2360_v51 = vrot.slane %v2351_v1, %v4111_v53 }
 0x581   : > { %v2354_v11 = vrot.slane %v2352_v55, 7  ;;  %v2361_v43 = vmul.f32 %v2360_v51, %v4736_v27  ;;  %v2362_v16 = vmul.f32 %v2360_v51, %v4740_v50  ;;  %v2363_v26 = vmul.f32 %v4734_v0, %v2360_v51 }
 0x582   : > { %v2364_v36 = vmul.f32 %v4738_v13, %v2360_v51  ;;  %v2365_v12 = vmul.f32 %v2360_v51, %v4753_v10  ;;  %v2366_v2 = vmul.f32 %v2360_v51, %v4763_v46  ;;  %v2367_v54 = vmul.f32 %v4748_v15, %v2360_v51 }
 0x583   : > { %v2356_v47 = vsub.f32 %v3010_v59, %v2354_v11  ;;  %v2368_v20 = vmul.f32 %v4758_v18, %v2360_v51  ;;  %v2369_v53 = vmul.f32 %v2360_v51, %v4773_v30  ;;  %v2370_v31 = vmul.f32 %v2360_v51, %v4783_v3 }
 0x584   : > { %v2371_v27 = vmul.f32 %v4768_v19, %v2360_v51  ;;  %v2372_v50 = vmul.f32 %v4778_v24, %v2360_v51  ;;  %v2373_v0 = vmul.f32 %v2360_v51, %v4793_v62  ;;  %v2374_v13 = vmul.f32 %v2360_v51, %v4803_v4 }
 0x585   : > { %v2375_v10 = vmul.f32 %v4788_v21, %v2360_v51  ;;  %v2376_v46 = vmul.f32 %v4798_v6, %v2360_v51  ;;  %v2377_v15 = vmul.f32 %v2360_v51, %v4813_v39  ;;  %v2378_v18 = vmul.f32 %v2360_v51, %v4823_v44 }
 0x586   : > { %v2379_v30 = vmul.f32 %v4808_v14, %v2360_v51  ;;  %v2380_v3 = vmul.f32 %v4818_v37, %v2360_v51  ;;  %v2381_v19 = vmul.f32 %v2360_v51, %v4833_v63  ;;  %v2382_v24 = vmul.f32 %v2360_v51, %v4843_v25 }
 0x587   : > { %v2383_v62 = vmul.f32 %v4828_v35, %v2360_v51  ;;  %v2384_v4 = vmul.f32 %v4838_v33, %v2360_v51  ;;  %v2385_v21 = vmul.f32 %v2360_v51, %v4853_v28  ;;  %v2386_v6 = vmul.f32 %v2360_v51, %v4863_v5 }
 0x588   : > { %v2387_v39 = vmul.f32 %v4848_v34, %v2360_v51  ;;  %v2388_v44 = vmul.f32 %v4858_v8, %v2360_v51  ;;  %v2396_v14 = vrot.slane %v2356_v47, %v4113_v57  ;;  %v2389_v37 = vmul.f32 %v2360_v51, %v4873_v61 }
 0x589   : > { %v2390_v63 = vmul.f32 %v2360_v51, %v4883_v29  ;;  %v2391_v25 = vmul.f32 %v4868_v17, %v2360_v51  ;;  %v2392_v35 = vmul.f32 %v4878_v49, %v2360_v51 }
 0x58a   : > { %v2397_v45 = vadd.f32 %v2396_v14, %v2361_v43  ;;  %v2398_v33 = vadd.f32 %v2396_v14, %v2362_v16  ;;  %v2399_v22 = vadd.f32 %v2396_v14, %v2363_v26  ;;  %v2400_v28 = vadd.f32 %v2396_v14, %v2364_v36 }
 0x58b   : > { %v2401_v42 = vadd.f32 %v2396_v14, %v2365_v12  ;;  %v2402_v5 = vadd.f32 %v2396_v14, %v2366_v2  ;;  %v2403_v32 = vadd.f32 %v2396_v14, %v2367_v54  ;;  %v2404_v34 = vadd.f32 %v2396_v14, %v2368_v20 }
 0x58c   : > { %v2405_v52 = vadd.f32 %v2396_v14, %v2369_v53  ;;  %v2406_v8 = vadd.f32 %v2396_v14, %v2370_v31  ;;  %v2407_v40 = vadd.f32 %v2396_v14, %v2371_v27  ;;  %v2408_v57 = vadd.f32 %v2396_v14, %v2372_v50 }
 0x58d   : > { %v2409_v58 = vadd.f32 %v2396_v14, %v2373_v0  ;;  %v2410_v61 = vadd.f32 %v2396_v14, %v2374_v13  ;;  %v2411_v41 = vadd.f32 %v2396_v14, %v2375_v10  ;;  %v2412_v29 = vadd.f32 %v2396_v14, %v2376_v46 }
 0x58e   : > { %v2413_v23 = vadd.f32 %v2396_v14, %v2377_v15  ;;  %v2414_v17 = vadd.f32 %v2396_v14, %v2378_v18  ;;  %v2415_v56 = vadd.f32 %v2396_v14, %v2379_v30  ;;  %v2416_v49 = vadd.f32 %v2396_v14, %v2380_v3 }
 0x58f   : > { %v4929_v48 = vadd.f32 %v2396_v14, %v2381_v19  ;;  %v4931_v38 = vadd.f32 %v2396_v14, %v2382_v24  ;;  %v4933_v7 = vadd.f32 %v2396_v14, %v2383_v62  ;;  %v4935_v60 = vadd.f32 %v2396_v14, %v2384_v4 }
 0x590   : > { %v4937_v59 = vadd.f32 %v2396_v14, %v2385_v21  ;;  %v4939_v9 = vadd.f32 %v2396_v14, %v2386_v6  ;;  %v4941_v1 = vadd.f32 %v2396_v14, %v2387_v39  ;;  %v4943_v55 = vadd.f32 %v2396_v14, %v2388_v44 }
 0x591   : > { %v4945_v51 = vadd.f32 %v2396_v14, %v2389_v37  ;;  %v4947_v11 = vadd.f32 %v2396_v14, %v2390_v63  ;;  %v4949_v43 = vadd.f32 %v2396_v14, %v2391_v25  ;;  %v4951_v16 = vadd.f32 %v2396_v14, %v2392_v35 }
 0x592   : > { %v2429_v26 = vmax.f32 %v2397_v45, 0.0  ;;  %v2430_v36 = vmax.f32 %v2398_v33, 0.0  ;;  %v2431_v12 = vmax.f32 %v2399_v22, 0.0  ;;  %v2432_v2 = vmax.f32 %v2400_v28, 0.0 }
 0x593   : > { %v2433_v47 = vmax.f32 %v2401_v42, 0.0  ;;  %v2434_v54 = vmax.f32 %v2402_v5, 0.0  ;;  %v2435_v20 = vmax.f32 %v2403_v32, 0.0  ;;  %v2436_v53 = vmax.f32 %v2404_v34, 0.0 }
 0x594   : > { %v2437_v31 = vmax.f32 %v2405_v52, 0.0  ;;  %v2438_v27 = vmax.f32 %v2406_v8, 0.0  ;;  %v2439_v50 = vmax.f32 %v2407_v40, 0.0  ;;  %v2440_v0 = vmax.f32 %v2408_v57, 0.0  ;;  %2461 = vst [vmem:[#allocation2 + $0xb0] sm:$0xff] %v2429_v26  ;;  %2462 = vst [vmem:[#allocation2] sm:$0xff] %v2430_v36 }
 0x595   : > { %2463 = vst [vmem:[#allocation2 + $0xd8] sm:$0xff] %v2431_v12  ;;  %2464 = vst [vmem:[#allocation2 + $0x18] sm:$0xff] %v2432_v2  ;;  %v2441_v13 = vmax.f32 %v2409_v58, 0.0  ;;  %v2442_v10 = vmax.f32 %v2410_v61, 0.0  ;;  %v2443_v46 = vmax.f32 %v2411_v41, 0.0  ;;  %v2444_v15 = vmax.f32 %v2412_v29, 0.0 }
 0x596   : > { %2465 = vst [vmem:[#allocation2 + $0x50] sm:$0xff] %v2433_v47  ;;  %2466 = vst [vmem:[#allocation2 + $0x68] sm:$0xff] %v2434_v54  ;;  %v2445_v18 = vmax.f32 %v2413_v23, 0.0  ;;  %v2446_v30 = vmax.f32 %v2414_v17, 0.0  ;;  %v2447_v3 = vmax.f32 %v2415_v56, 0.0  ;;  %v2448_v19 = vmax.f32 %v2416_v49, 0.0 }
 0x597   : > { %2467 = vst [vmem:[#allocation2 + $0x30] sm:$0xff] %v2435_v20  ;;  %2468 = vst [vmem:[#allocation2 + $0x48] sm:$0xff] %v2436_v53  ;;  %v2449_v24 = vmax.f32 %v4929_v48, 0.0  ;;  %v2450_v62 = vmax.f32 %v4931_v38, 0.0  ;;  %v2451_v4 = vmax.f32 %v4933_v7, 0.0  ;;  %v2452_v21 = vmax.f32 %v4935_v60, 0.0 }
 0x598   : > { %2469 = vst [vmem:[#allocation2 + $0x80] sm:$0xff] %v2437_v31  ;;  %2470 = vst [vmem:[#allocation2 + $0x88] sm:$0xff] %v2438_v27  ;;  %v2453_v6 = vmax.f32 %v4937_v59, 0.0  ;;  %v2454_v39 = vmax.f32 %v4939_v9, 0.0  ;;  %v2455_v44 = vmax.f32 %v4941_v1, 0.0  ;;  %v2456_v14 = vmax.f32 %v4943_v55, 0.0 }
 0x599   : > { %2471 = vst [vmem:[#allocation2 + $0xe8] sm:$0xff] %v2439_v50  ;;  %2472 = vst [vmem:[#allocation2 + $0xb8] sm:$0xff] %v2440_v0  ;;  %v2457_v37 = vmax.f32 %v4945_v51, 0.0  ;;  %v2458_v63 = vmax.f32 %v4947_v11, 0.0  ;;  %v2459_v25 = vmax.f32 %v4949_v43, 0.0  ;;  %v2460_v35 = vmax.f32 %v4951_v16, 0.0 }
 0x59a   : > { %2473 = vst [vmem:[#allocation2 + $0x60] sm:$0xff] %v2441_v13  ;;  %2474 = vst [vmem:[#allocation2 + $0xf0] sm:$0xff] %v2442_v10 }
 0x59b   : > { %2475 = vst [vmem:[#allocation2 + $0x8] sm:$0xff] %v2443_v46  ;;  %2476 = vst [vmem:[#allocation2 + $0x78] sm:$0xff] %v2444_v15 }
 0x59c   : > { %2477 = vst [vmem:[#allocation2 + $0x38] sm:$0xff] %v2445_v18  ;;  %2478 = vst [vmem:[#allocation2 + $0x58] sm:$0xff] %v2446_v30 }
 0x59d   : > { %2479 = vst [vmem:[#allocation2 + $0x40] sm:$0xff] %v2447_v3  ;;  %2480 = vst [vmem:[#allocation2 + $0xc8] sm:$0xff] %v2448_v19 }
 0x59e   : > { %2481 = vst [vmem:[#allocation2 + $0xe0] sm:$0xff] %v2449_v24  ;;  %2482 = vst [vmem:[#allocation2 + $0x90] sm:$0xff] %v2450_v62 }
 0x59f   : > { %2483 = vst [vmem:[#allocation2 + $0x70] sm:$0xff] %v2451_v4  ;;  %2484 = vst [vmem:[#allocation2 + $0xc0] sm:$0xff] %v2452_v21  ;;  %2496 = sbr.rel (%p3011_p3) target bundleno = 1703 (0x6a7), region = 64 }
 0x5a0   : > { %2485 = vst [vmem:[#allocation2 + $0xa8] sm:$0xff] %v2453_v6  ;;  %2486 = vst [vmem:[#allocation2 + $0xd0] sm:$0xff] %v2454_v39 }
 0x5a1   : > { %2487 = vst [vmem:[#allocation2 + $0x10] sm:$0xff] %v2455_v44  ;;  %2488 = vst [vmem:[#allocation2 + $0x28] sm:$0xff] %v2456_v14 }
 0x5a2   : > { %2489 = vst [vmem:[#allocation2 + $0xa0] sm:$0xff] %v2457_v37  ;;  %2490 = vst [vmem:[#allocation2 + $0xf8] sm:$0xff] %v2458_v63 }
 0x5a3   : > { %2491 = vst [vmem:[#allocation2 + $0x20] sm:$0xff] %v2459_v25  ;;  %2492 = vst [vmem:[#allocation2 + $0x98] sm:$0xff] %v2460_v35 }
 0x5a4   : > { %v3524_v45 = vld [vmem:[#allocation9 + $0x38] sm:$0xff]   ;;  %v3525_v33 = vld [vmem:[#allocation9 + $0x30] sm:$0xff]   ;;  %v3526_v22 = vld [vmem:[#allocation9 + $0x28] sm:$0xff]  }
 0x5a5   : > { %3340 = vmatprep.subr.bf16.mxu0 %v3524_v45  ;;  %3388 = vmatprep.subr.bf16.mxu1 %v3524_v45  ;;  %v3527_v28 = vld [vmem:[#allocation9 + $0x20] sm:$0xff]   ;;  %v2498_v5 = vld [vmem:[#allocation2] sm:$0xff]  ;;  %v2513_v32 = vld [vmem:[#allocation2 + $0x38] sm:$0xff] }
 0x5a6   : > { %3341 = vmatpush3.bf16.msra.mxu0 %v3524_v45  ;;  %3396 = vmatpush3.bf16.msra.mxu1 %v3524_v45  ;;  %v2497_v42 = vld [vmem:[#allocation2 + $0xb0] sm:$0xff]  ;;  %v2514_v52 = vld [vmem:[#allocation2 + $0x58] sm:$0xff]  ;;  %v3528_v40 = vld [vmem:[#allocation9 + $0x18] sm:$0xff]  }
 0x5a7   : > { %3342 = vmatprep.subr.bf16.mxu0 %v3525_v33  ;;  %3389 = vmatprep.subr.bf16.mxu1 %v3525_v33  ;;  %v2529_v34 = vpack.c.bf16 %v2498_v5, %v2497_v42  ;;  %v2537_v8 = vpack.c.bf16 %v2514_v52, %v2513_v32  ;;  %v3529_v57 = vld [vmem:[#allocation9 + $0x10] sm:$0xff]   ;;  %v3530_v58 = vld [vmem:[#allocation9 + $0x8] sm:$0xff]   ;;  %v3531_v61 = vld [vmem:[#allocation9] sm:$0xff]  }
 0x5a8   : > { %v2499_v41 = vld [vmem:[#allocation2 + $0xd8] sm:$0xff]  ;;  %v2515_v23 = vld [vmem:[#allocation2 + $0x40] sm:$0xff]  ;;  %v2516_v17 = vld [vmem:[#allocation2 + $0xc8] sm:$0xff] }
 0x5a9   : > { %3356 = vmatprep.mubr.bf16.mxu0 %v2529_v34  ;;  %3372 = vmatprep.mubr.bf16.mxu1 %v2537_v8  ;;  %v2500_v29 = vld [vmem:[#allocation2 + $0x18] sm:$0xff]  ;;  %v2501_v56 = vld [vmem:[#allocation2 + $0x50] sm:$0xff]  ;;  %v2502_v49 = vld [vmem:[#allocation2 + $0x68] sm:$0xff]  ;;  %v2538_v60 = vpack.c.bf16 %v2516_v17, %v2515_v23 }
 0x5aa   : > { %3343 = vmatpush3.bf16.msra.mxu0 %v3525_v33  ;;  %3397 = vmatpush3.bf16.msra.mxu1 %v3525_v33  ;;  %v2517_v48 = vld [vmem:[#allocation2 + $0xe0] sm:$0xff]  ;;  %v2518_v38 = vld [vmem:[#allocation2 + $0x90] sm:$0xff]  ;;  %v2530_v7 = vpack.c.bf16 %v2500_v29, %v2499_v41  ;;  %v2531_v59 = vpack.c.bf16 %v2502_v49, %v2501_v56  ;;  %v2504_v55 = vld [vmem:[#allocation2 + $0x48] sm:$0xff] }
 0x5ab   : > { %3344 = vmatprep.subr.bf16.mxu0 %v3526_v22  ;;  %3390 = vmatprep.subr.bf16.mxu1 %v3526_v22  ;;  %v2539_v9 = vpack.c.bf16 %v2518_v38, %v2517_v48  ;;  %v2503_v1 = vld [vmem:[#allocation2 + $0x30] sm:$0xff]  ;;  %v2520_v11 = vld [vmem:[#allocation2 + $0xc0] sm:$0xff]  ;;  %v2506_v16 = vld [vmem:[#allocation2 + $0x88] sm:$0xff] }
 0x5ac   : > { %v2519_v51 = vld [vmem:[#allocation2 + $0x70] sm:$0xff]  ;;  %v2505_v43 = vld [vmem:[#allocation2 + $0x80] sm:$0xff]  ;;  %v2521_v26 = vld [vmem:[#allocation2 + $0xa8] sm:$0xff]  ;;  %v2532_v12 = vpack.c.bf16 %v2504_v55, %v2503_v1 }
 0x5ad   : > { %v2522_v36 = vld [vmem:[#allocation2 + $0xd0] sm:$0xff]  ;;  %v2540_v2 = vpack.c.bf16 %v2520_v11, %v2519_v51  ;;  %v2533_v47 = vpack.c.bf16 %v2506_v16, %v2505_v43  ;;  %v2507_v20 = vld [vmem:[#allocation2 + $0xe8] sm:$0xff]  ;;  %v2508_v53 = vld [vmem:[#allocation2 + $0xb8] sm:$0xff] }
 0x5ae   : > { %3345 = vmatpush3.bf16.msra.mxu0 %v3526_v22  ;;  %3398 = vmatpush3.bf16.msra.mxu1 %v3526_v22  ;;  %v2541_v54 = vpack.c.bf16 %v2522_v36, %v2521_v26  ;;  %v2523_v31 = vld [vmem:[#allocation2 + $0x10] sm:$0xff]  ;;  %v2524_v27 = vld [vmem:[#allocation2 + $0x28] sm:$0xff]  ;;  %v2509_v50 = vld [vmem:[#allocation2 + $0x60] sm:$0xff]  ;;  %v2534_v46 = vpack.c.bf16 %v2508_v53, %v2507_v20 }
 0x5af   : > { %3346 = vmatprep.subr.bf16.mxu0 %v3527_v28  ;;  %3391 = vmatprep.subr.bf16.mxu1 %v3527_v28  ;;  %v2510_v0 = vld [vmem:[#allocation2 + $0xf0] sm:$0xff]  ;;  %v2525_v13 = vld [vmem:[#allocation2 + $0xa0] sm:$0xff]  ;;  %v2526_v10 = vld [vmem:[#allocation2 + $0xf8] sm:$0xff]  ;;  %v2542_v15 = vpack.c.bf16 %v2524_v27, %v2523_v31 }
 0x5b0   : > { %v2535_v18 = vpack.c.bf16 %v2510_v0, %v2509_v50  ;;  %v2543_v30 = vpack.c.bf16 %v2526_v10, %v2525_v13  ;;  %v2511_v3 = vld [vmem:[#allocation2 + $0x8] sm:$0xff]  ;;  %v2512_v19 = vld [vmem:[#allocation2 + $0x78] sm:$0xff]  ;;  %v2527_v24 = vld [vmem:[#allocation2 + $0x20] sm:$0xff] }
 0x5b1   : > { %v2528_v62 = vld [vmem:[#allocation2 + $0x98] sm:$0xff]  ;;  %v2536_v4 = vpack.c.bf16 %v2512_v19, %v2511_v3  ;;  %v4969_v6 = vld [vmem:[%s5032_s4] ss:$0 sm:$0xff] }
 0x5b2   : > { %3347 = vmatpush3.bf16.msra.mxu0 %v3527_v28  ;;  %3399 = vmatpush3.bf16.msra.mxu1 %v3527_v28  ;;  %v2544_v21 = vpack.c.bf16 %v2528_v62, %v2527_v24 }
 0x5b3   : > { %3348 = vmatprep.subr.bf16.mxu0 %v3528_v40  ;;  %3392 = vmatprep.subr.bf16.mxu1 %v3528_v40 }
 0x5b6   : > { %3349 = vmatpush3.bf16.msra.mxu0 %v3528_v40  ;;  %3400 = vmatpush3.bf16.msra.mxu1 %v3528_v40 }
 0x5b7   : > { %3350 = vmatprep.subr.bf16.mxu0 %v3529_v57  ;;  %3393 = vmatprep.subr.bf16.mxu1 %v3529_v57 }
 0x5ba   : > { %3351 = vmatpush3.bf16.msra.mxu0 %v3529_v57  ;;  %3401 = vmatpush3.bf16.msra.mxu1 %v3529_v57 }
 0x5bb   : > { %3352 = vmatprep.subr.bf16.mxu0 %v3530_v58  ;;  %3394 = vmatprep.subr.bf16.mxu1 %v3530_v58 }
 0x5be   : > { %3353 = vmatpush3.bf16.msra.mxu0 %v3530_v58  ;;  %3402 = vmatpush3.bf16.msra.mxu1 %v3530_v58 }
 0x5bf   : > { %3354 = vmatprep.subr.bf16.mxu0 %v3531_v61  ;;  %3395 = vmatprep.subr.bf16.mxu1 %v3531_v61 }
 0x5c2   : > { %3355 = vmatpush3.bf16.msra.mxu0 %v3531_v61  ;;  %3403 = vmatpush3.bf16.msra.mxu1 %v3531_v61 }
 0x5c5   : > { %3357 = vmatmul.mubr.bf16.vlgmr.msra.gmra.mxu0 %v2530_v7  ;;  %3373 = vmatmul.mubr.bf16.vlgmr.msra.gmra.mxu1 %v2538_v60 }
 0x5c6   : > { %3360 = vmatprep.mubr.bf16.mxu0 %v2531_v59  ;;  %3376 = vmatprep.mubr.bf16.mxu1 %v2539_v9 }
 0x5cd   : > { %3361 = vmatmul.mubr.bf16.gmra.mxu0 %v2532_v12  ;;  %3377 = vmatmul.mubr.bf16.gmra.mxu1 %v2540_v2 }
 0x5ce   : > { %3364 = vmatprep.mubr.bf16.mxu0 %v2533_v47  ;;  %3380 = vmatprep.mubr.bf16.mxu1 %v2541_v54 }
 0x5d5   : > { %3365 = vmatmul.mubr.bf16.gmra.mxu0 %v2534_v46  ;;  %3381 = vmatmul.mubr.bf16.gmra.mxu1 %v2542_v15 }
 0x5d6   : > { %3368 = vmatprep.mubr.bf16.mxu0 %v2535_v18  ;;  %3384 = vmatprep.mubr.bf16.mxu1 %v2543_v30 }
 0x5dd   : > { %3369 = vmatmul.mubr.bf16.gmra.mxu0 %v2536_v4  ;;  %3385 = vmatmul.mubr.bf16.gmra.mxu1 %v2544_v21 }
 0x685   : > { %v3358_v39 = vpop.f32.mrf.mxu0  ;;  %v3374_v44 = vpop.f32.mrf.mxu1 }
 0x686   : > { %v2659_v14 = vadd.f32 %v3358_v39, %v4969_v6  ;;  %v2723_v37 = vadd.f32 %v3374_v44, %v4969_v6 }
 0x687   : > { %v2650_v63 = vpop.f32.mrf.mxu0  ;;  %v2714_v25 = vpop.f32.mrf.mxu1 }
 0x688   : > { %2779 = vst [vmem:[#allocation11 + $0x10] sm:$0xff] %v2659_v14  ;;  %2795 = vst [vmem:[#allocation11 + $0x90] sm:$0xff] %v2723_v37  ;;  %v2651_v35 = vadd.f32 %v4969_v6, %v2650_v63  ;;  %v2715_v45 = vadd.f32 %v4969_v6, %v2714_v25 }
 0x689   : > { %v3359_v33 = vpop.f32.mrf.mxu0  ;;  %v3375_v22 = vpop.f32.mrf.mxu1 }
 0x68a   : > { %2777 = vst [vmem:[#allocation11] sm:$0xff] %v2651_v35  ;;  %2793 = vst [vmem:[#allocation11 + $0x80] sm:$0xff] %v2715_v45  ;;  %v2662_v28 = vadd.f32 %v3359_v33, %v4969_v6  ;;  %v2726_v42 = vadd.f32 %v3375_v22, %v4969_v6 }
 0x68b   : > { %v2653_v5 = vpop.f32.mrf.mxu0  ;;  %v2717_v32 = vpop.f32.mrf.mxu1 }
 0x68c   : > { %2780 = vst [vmem:[#allocation11 + $0x18] sm:$0xff] %v2662_v28  ;;  %2796 = vst [vmem:[#allocation11 + $0x98] sm:$0xff] %v2726_v42  ;;  %v2654_v34 = vadd.f32 %v4969_v6, %v2653_v5  ;;  %v2718_v52 = vadd.f32 %v4969_v6, %v2717_v32 }
 0x68d   : > { %v3362_v8 = vpop.f32.mrf.mxu0  ;;  %v3378_v40 = vpop.f32.mrf.mxu1 }
 0x68e   : > { %2778 = vst [vmem:[#allocation11 + $0x8] sm:$0xff] %v2654_v34  ;;  %2794 = vst [vmem:[#allocation11 + $0x88] sm:$0xff] %v2718_v52  ;;  %v2675_v57 = vadd.f32 %v3362_v8, %v4969_v6  ;;  %v2739_v58 = vadd.f32 %v3378_v40, %v4969_v6 }
 0x68f   : > { %v2666_v61 = vpop.f32.mrf.mxu0  ;;  %v2730_v41 = vpop.f32.mrf.mxu1 }
 0x690   : > { %2783 = vst [vmem:[#allocation11 + $0x30] sm:$0xff] %v2675_v57  ;;  %2799 = vst [vmem:[#allocation11 + $0xb0] sm:$0xff] %v2739_v58  ;;  %v2667_v29 = vadd.f32 %v4969_v6, %v2666_v61  ;;  %v2731_v23 = vadd.f32 %v4969_v6, %v2730_v41 }
 0x691   : > { %v3363_v17 = vpop.f32.mrf.mxu0  ;;  %v3379_v56 = vpop.f32.mrf.mxu1 }
 0x692   : > { %2781 = vst [vmem:[#allocation11 + $0x20] sm:$0xff] %v2667_v29  ;;  %2797 = vst [vmem:[#allocation11 + $0xa0] sm:$0xff] %v2731_v23  ;;  %v2678_v49 = vadd.f32 %v3363_v17, %v4969_v6  ;;  %v2742_v48 = vadd.f32 %v3379_v56, %v4969_v6 }
 0x693   : > { %v2669_v38 = vpop.f32.mrf.mxu0  ;;  %v2733_v7 = vpop.f32.mrf.mxu1 }
 0x694   : > { %2784 = vst [vmem:[#allocation11 + $0x38] sm:$0xff] %v2678_v49  ;;  %2800 = vst [vmem:[#allocation11 + $0xb8] sm:$0xff] %v2742_v48  ;;  %v2670_v60 = vadd.f32 %v4969_v6, %v2669_v38  ;;  %v2734_v59 = vadd.f32 %v4969_v6, %v2733_v7 }
 0x695   : > { %v3366_v9 = vpop.f32.mrf.mxu0  ;;  %v3382_v1 = vpop.f32.mrf.mxu1 }
 0x696   : > { %2782 = vst [vmem:[#allocation11 + $0x28] sm:$0xff] %v2670_v60  ;;  %2798 = vst [vmem:[#allocation11 + $0xa8] sm:$0xff] %v2734_v59  ;;  %v2691_v55 = vadd.f32 %v3366_v9, %v4969_v6  ;;  %v2755_v51 = vadd.f32 %v3382_v1, %v4969_v6 }
 0x697   : > { %v2682_v11 = vpop.f32.mrf.mxu0  ;;  %v2746_v43 = vpop.f32.mrf.mxu1 }
 0x698   : > { %2787 = vst [vmem:[#allocation11 + $0x50] sm:$0xff] %v2691_v55  ;;  %2803 = vst [vmem:[#allocation11 + $0xd0] sm:$0xff] %v2755_v51  ;;  %v2683_v16 = vadd.f32 %v4969_v6, %v2682_v11  ;;  %v2747_v26 = vadd.f32 %v4969_v6, %v2746_v43 }
 0x699   : > { %v3367_v36 = vpop.f32.mrf.mxu0  ;;  %v3383_v12 = vpop.f32.mrf.mxu1 }
 0x69a   : > { %2785 = vst [vmem:[#allocation11 + $0x40] sm:$0xff] %v2683_v16  ;;  %2801 = vst [vmem:[#allocation11 + $0xc0] sm:$0xff] %v2747_v26  ;;  %v2694_v2 = vadd.f32 %v3367_v36, %v4969_v6  ;;  %v2758_v47 = vadd.f32 %v3383_v12, %v4969_v6 }
 0x69b   : > { %v2685_v54 = vpop.f32.mrf.mxu0  ;;  %v2749_v20 = vpop.f32.mrf.mxu1 }
 0x69c   : > { %2788 = vst [vmem:[#allocation11 + $0x58] sm:$0xff] %v2694_v2  ;;  %2804 = vst [vmem:[#allocation11 + $0xd8] sm:$0xff] %v2758_v47  ;;  %v2686_v53 = vadd.f32 %v4969_v6, %v2685_v54  ;;  %v2750_v31 = vadd.f32 %v4969_v6, %v2749_v20 }
 0x69d   : > { %v3370_v27 = vpop.f32.mrf.mxu0  ;;  %v3386_v50 = vpop.f32.mrf.mxu1 }
 0x69e   : > { %2786 = vst [vmem:[#allocation11 + $0x48] sm:$0xff] %v2686_v53  ;;  %2802 = vst [vmem:[#allocation11 + $0xc8] sm:$0xff] %v2750_v31  ;;  %v2707_v0 = vadd.f32 %v3370_v27, %v4969_v6  ;;  %v2771_v13 = vadd.f32 %v3386_v50, %v4969_v6 }
 0x69f   : > { %v2698_v10 = vpop.f32.mrf.mxu0  ;;  %v2762_v46 = vpop.f32.mrf.mxu1 }
 0x6a0   : > { %2791 = vst [vmem:[#allocation11 + $0x70] sm:$0xff] %v2707_v0  ;;  %2807 = vst [vmem:[#allocation11 + $0xf0] sm:$0xff] %v2771_v13  ;;  %v2699_v15 = vadd.f32 %v4969_v6, %v2698_v10  ;;  %v2763_v18 = vadd.f32 %v4969_v6, %v2762_v46 }
 0x6a1   : > { %v3371_v30 = vpop.f32.mrf.mxu0  ;;  %v3387_v3 = vpop.f32.mrf.mxu1 }
 0x6a2   : > { %2789 = vst [vmem:[#allocation11 + $0x60] sm:$0xff] %v2699_v15  ;;  %2805 = vst [vmem:[#allocation11 + $0xe0] sm:$0xff] %v2763_v18  ;;  %v2710_v19 = vadd.f32 %v3371_v30, %v4969_v6  ;;  %v2774_v24 = vadd.f32 %v3387_v3, %v4969_v6 }
 0x6a3   : > { %v2701_v62 = vpop.f32.mrf.mxu0  ;;  %v2765_v4 = vpop.f32.mrf.mxu1 }
 0x6a4   : > { %2792 = vst [vmem:[#allocation11 + $0x78] sm:$0xff] %v2710_v19  ;;  %2808 = vst [vmem:[#allocation11 + $0xf8] sm:$0xff] %v2774_v24  ;;  %v2702_v21 = vadd.f32 %v4969_v6, %v2701_v62  ;;  %v2766_v39 = vadd.f32 %v4969_v6, %v2765_v4 }
 0x6a6   : > { %2790 = vst [vmem:[#allocation11 + $0x68] sm:$0xff] %v2702_v21  ;;  %2806 = vst [vmem:[#allocation11 + $0xe8] sm:$0xff] %v2766_v39 }
 0x6a7 PF: > { %p3439_p8 = scmp.eq.s32.totalorder %s3838_s13, 1  ;;  %s3722_s7 = smov [#allocation11]  }
 0x6a8   : > { %s2815_s26 = sshll.u32 %s3722_s7, 4  ;;  %s2816_s26 = int_to_ptr.vmem [resolvable:$true] %s2815_s26 }
 0x6a9   : > { %s3640_s27 = scalar_lea.vmem %s2816_s26, 4096  ;;  %p3647_p10 = scmp.lt.s32.totalorder %s2816_s26, %s2816_s26 }
 0x6aa   : > { %p3641_p11 = scmp.ne.s32.totalorder %s2816_s26, %s3640_s27  ;;  %p3648_p13 = scmp.lt.s32.totalorder %s3640_s27, %s3640_s27 }
 0x6ac   : > { %p3642_p9 = pnand %p3641_p11, %p3439_p8  ;;  %p3649_p4 = por %p3648_p13, %p3647_p10 }
 0x6ae   : > { %p3643_p7 = pneg %p3642_p9 }
 0x6b0   : > { %p3650_p0 = pnand %p3649_p4, %p3643_p7 }
 0x6b2   : > { %3653 = shalt.err (!%p3650_p0)
}
 0x6b3   : > { %s3723_s28 = smov 128   ;;  %s3724_s21 = smov 8  }
 0x6b4   : > { %3417 = dma.vmem_to_hbm [thread:$0]  (%p3439_p8), %s2816_s26, 4096, %s5033_s5, [#allocation5], %s3723_s28, %s3723_s28, %s3724_s21  }
 0x6b5   : > { %3693 = dma.done.wait (%p3439_p8), [#allocation5], 4096  }
 0x6b6   : > { %3695 = vsyncadd (%p3439_p8), [#allocation5], 4294963200 }
 0x6b7 PF: > { %p18_p12 = scmp.ge.s32.totalorder %s3776_s22, 4   ;;  %s5049_s18 = smov %s3702_s19 }
 0x6b8   : > { %s5050_s19 = smov %s3706_s20  ;;  %s5051_s20 = smov %s3785_s25 }
 0x6b9   : > { %s5052_s21 = smov %s3776_s22  ;;  %20 = sbr.rel (!%p18_p12) target bundleno = 6 (0x6), region = 111 }
 0x6be   :  { %2831 = vsyncpa [#allocation4], 1 }
 0x6bf   :  { %2833 = vsyncpa [#allocation4 + $0x1], 1 }
 0x6c0   :  { %2834 = vsyncpa [#allocation7], 1 }
 0x6c1   :  { %2836 = vsyncpa [#allocation7 + $0x1], 1 }
 0x6c2   :  { %2837 = vsyncpa [#allocation10], 1 }
 0x6c3   :  { %2838 = vsyncpa [#allocation5], 1 }
 0x6c4   :  { %2840 = vsyncpa [#allocation5 + $0x1], 1 }

</bundles_post_ra>
